<compile_context>
chip_gen: v5e
topology: v5e:2x2
jax: 0.10.0
libtpu: 0.0.40
codegen_flags: <defaults>
</compile_context>

<pallas_src>
import functools

import jax
import jax.numpy as jnp
from jax.experimental import pallas as pl
from jax.experimental.pallas import tpu as pltpu

LANES = 128
_VMEM = pl.BlockSpec(memory_space=pltpu.MemorySpace.VMEM)


def _round_up(n, m):
    return (n + m - 1) // m * m


# ---------------------------------------------------------------------------
# Pallas kernels
# ---------------------------------------------------------------------------
def _conv_relu_pool_kernel(p_ref, w_ref, b_ref, o_ref):
    """Fused conv (matmul over im2col patches) + bias + ReLU + 2x2 max-pool.

    p_ref: [4, tile_m, K] bf16 -- the 4 pooling phases of the same pooled output
           rows; rows within each phase block are identically ordered (b, ph, pw).
    w_ref: [K, 128]  bf16 (output channels zero-padded to 128 lanes).
    b_ref: [1, 128]  f32.
    o_ref: [tile_m, 128] bf16 -- pooled, lane-dense output.
    """
    w = w_ref[...]
    b = b_ref[...]

    def phase(q):
        acc = jnp.dot(p_ref[q], w, preferred_element_type=jnp.float32)
        return jnp.maximum(acc + b, 0.0)                 # bias + ReLU

    pooled = jnp.maximum(jnp.maximum(phase(0), phase(1)),
                         jnp.maximum(phase(2), phase(3)))
    o_ref[...] = pooled.astype(o_ref.dtype)


def _mlp_kernel(a_ref, w1_ref, b1_ref, w2_ref, b2_ref, w3_ref, b3_ref, o_ref):
    """fc1+ReLU -> fc2+ReLU -> fc3 in one kernel. bf16 matmuls, f32 accumulate.
    Padded weight rows/columns are zero, so the pad lanes stay exactly zero."""
    h = jnp.dot(a_ref[...], w1_ref[...], preferred_element_type=jnp.float32) + b1_ref[...]
    h = jnp.maximum(h, 0.0).astype(jnp.bfloat16)
    h = jnp.dot(h, w2_ref[...], preferred_element_type=jnp.float32) + b2_ref[...]
    h = jnp.maximum(h, 0.0).astype(jnp.bfloat16)
    o = jnp.dot(h, w3_ref[...], preferred_element_type=jnp.float32) + b3_ref[...]
    o_ref[...] = o


# ---------------------------------------------------------------------------
# Pallas wrappers
# ---------------------------------------------------------------------------
def conv_relu_pool(patches, wmat, bias, tile_m):
    """patches: [4, mq_pad, K] bf16, wmat: [K, 128] bf16, bias: [1, 128] f32."""
    _, mq_pad, k_dim = patches.shape
    grid = (mq_pad // tile_m,)
    return pl.pallas_call(
        _conv_relu_pool_kernel,
        out_shape=jax.ShapeDtypeStruct((mq_pad, LANES), jnp.bfloat16),
        grid=grid,
        in_specs=[
            pl.BlockSpec((4, tile_m, k_dim), lambda i: (0, i, 0)),
            pl.BlockSpec((k_dim, LANES), lambda i: (0, 0)),
            pl.BlockSpec((1, LANES), lambda i: (0, 0)),
        ],
        out_specs=pl.BlockSpec((tile_m, LANES), lambda i: (i, 0)),
        compiler_params=pltpu.CompilerParams(dimension_semantics=("parallel",)),
    )(patches, wmat, bias)


def mlp_fused(a, w1, b1, w2, b2, w3, b3):
    B = a.shape[0]
    return pl.pallas_call(
        _mlp_kernel,
        out_shape=jax.ShapeDtypeStruct((B, LANES), jnp.float32),
        in_specs=[_VMEM] * 7,
        out_specs=_VMEM,
    )(a, w1, b1, w2, b2, w3, b3)


# ---------------------------------------------------------------------------
# Host-side glue: phase-major im2col (so pooling lives in the kernel epilogue)
# ---------------------------------------------------------------------------
def _im2col_pool_phases(x, k):
    """x: [B, H, W, C] bf16 (NHWC). Valid kxk conv patches, grouped by the 2x2
    pooling phase. Returns (patches [4, mq_pad, k*k*C], PH, PW, mq, tile_m)."""
    B, H, W, C = x.shape
    OH, OW = H - k + 1, W - k + 1
    PH, PW = OH // 2, OW // 2
    taps = [x[:, di:di + OH, dj:dj + OW, :] for di in range(k) for dj in range(k)]
    t = jnp.stack(taps, axis=3)                          # [B, OH, OW, k*k, C]
    t = t[:, :2 * PH, :2 * PW]                           # floor-pool semantics
    t = t.reshape(B, PH, 2, PW, 2, k * k, C)
    t = t.transpose(2, 4, 0, 1, 3, 5, 6)                 # [2, 2, B, PH, PW, k*k, C]
    mq = B * PH * PW
    t = t.reshape(4, mq, k * k * C)
    # Pad rows so phase blocks are tile-aligned and divisible by the M tile.
    mq_pad = _round_up(mq, 16)
    tile_m = min(mq_pad, 1024)
    mq_pad = _round_up(mq_pad, tile_m)
    if mq_pad != mq:
        t = jnp.pad(t, ((0, 0), (0, mq_pad - mq), (0, 0)))
    return t, PH, PW, mq, tile_m


# ---------------------------------------------------------------------------
# Parameters (PyTorch-like layout) + one-time repack into kernel layouts
# ---------------------------------------------------------------------------
def init_lenet5_params(key, input_shape, num_classes):
    channels, height, width = input_shape
    conv1_out = (height - 5 + 1) // 2
    conv2_out = (conv1_out - 5 + 1) // 2
    fc_in = 16 * conv2_out * conv2_out

    keys = jax.random.split(key, 10)

    def u(k, shape, fan_in):
        bound = 1.0 / jnp.sqrt(fan_in)
        return jax.random.uniform(k, shape, jnp.float32, -bound, bound)

    return {
        "conv1_w": u(keys[0], (6, channels, 5, 5), channels * 25),
        "conv1_b": u(keys[1], (6,), channels * 25),
        "conv2_w": u(keys[2], (16, 6, 5, 5), 6 * 25),
        "conv2_b": u(keys[3], (16,), 6 * 25),
        # FC weights stored as [in, out] (transpose of torch.nn.Linear.weight)
        "fc1_w": u(keys[4], (fc_in, 120), fc_in),
        "fc1_b": u(keys[5], (120,), fc_in),
        "fc2_w": u(keys[6], (120, 84), 120),
        "fc2_b": u(keys[7], (84,), 120),
        "fc3_w": u(keys[8], (84, num_classes), 84),
        "fc3_b": u(keys[9], (num_classes,), 84),
    }


def prepare_lenet5_params(params, input_shape, num_classes):
    """One-time repack: bf16 matmul weights, outputs zero-padded to 128 lanes,
    fc1 rows permuted from torch's (c,h,w) flatten order to the conv path's
    NHWC (h,w,c) flatten order."""
    assert num_classes <= LANES
    _, height, _ = input_shape
    conv1_out = (height - 5 + 1) // 2
    conv2_out = (conv1_out - 5 + 1) // 2

    def conv_mat(w, b):
        oc, c, k, _ = w.shape
        wm = w.transpose(2, 3, 1, 0).reshape(k * k * c, oc)   # K order = (di, dj, c)
        wm = jnp.pad(wm, ((0, 0), (0, LANES - oc)))
        bm = jnp.pad(b, (0, LANES - oc)).reshape(1, LANES)
        return wm.astype(jnp.bfloat16), bm.astype(jnp.float32)

    def fc_mat(w, b, k_pad, n_out):
        k_in = w.shape[0]
        wm = jnp.zeros((k_pad, LANES), jnp.float32).at[:k_in, :n_out].set(w)
        bm = jnp.zeros((1, LANES), jnp.float32).at[0, :n_out].set(b)
        return wm.astype(jnp.bfloat16), bm

    fc1_hwc = (params["fc1_w"]
               .reshape(16, conv2_out, conv2_out, 120)
               .transpose(1, 2, 0, 3)
               .reshape(conv2_out * conv2_out * 16, 120))

    kp = {}
    kp["conv1_w"], kp["conv1_b"] = conv_mat(params["conv1_w"], params["conv1_b"])
    kp["conv2_w"], kp["conv2_b"] = conv_mat(params["conv2_w"], params["conv2_b"])
    kp["fc1_w"], kp["fc1_b"] = fc_mat(fc1_hwc, params["fc1_b"], fc1_hwc.shape[0], 120)
    kp["fc2_w"], kp["fc2_b"] = fc_mat(params["fc2_w"], params["fc2_b"], LANES, 84)
    kp["fc3_w"], kp["fc3_b"] = fc_mat(params["fc3_w"], params["fc3_b"], LANES, num_classes)
    return kp


# ---------------------------------------------------------------------------
# LeNet-5 forward (3 fused Pallas kernels)
# ---------------------------------------------------------------------------
def lenet5_forward(kparams, x, *, num_classes):
    """x: [B, C, H, W] f32 (PyTorch NCHW). Returns [B, num_classes] f32 logits."""
    B = x.shape[0]
    x = x.transpose(0, 2, 3, 1).astype(jnp.bfloat16)     # single NCHW -> NHWC

    # conv1 + ReLU + 2x2 max-pool (one fused kernel)
    p1, ph1, pw1, mq1, tile1 = _im2col_pool_phases(x, 5)
    y1 = conv_relu_pool(p1, kparams["conv1_w"], kparams["conv1_b"], tile1)
    y1 = y1[:mq1].reshape(B, ph1, pw1, LANES)[..., :6]   # NHWC, real channels

    # conv2 + ReLU + 2x2 max-pool (one fused kernel)
    p2, ph2, pw2, mq2, tile2 = _im2col_pool_phases(y1, 5)
    y2 = conv_relu_pool(p2, kparams["conv2_w"], kparams["conv2_b"], tile2)
    y2 = y2[:mq2].reshape(B, ph2, pw2, LANES)[..., :16]  # [B, 5, 5, 16]

    # fc1 -> ReLU -> fc2 -> ReLU -> fc3 (one fused kernel)
    a = y2.reshape(B, ph2 * pw2 * 16)                    # (h, w, c) flatten order
    logits = mlp_fused(a, kparams["fc1_w"], kparams["fc1_b"],
                       kparams["fc2_w"], kparams["fc2_b"],
                       kparams["fc3_w"], kparams["fc3_b"])
    return logits[:, :num_classes]


# ---------------------------------------------------------------------------
# Pure-JAX f32 reference (for correctness check only)
# ---------------------------------------------------------------------------
def _ref_forward(params, x):
    def conv(x, w, b):
        y = jax.lax.conv_general_dilated(
            x, w, window_strides=(1, 1), padding="VALID",
            dimension_numbers=("NCHW", "OIHW", "NCHW"))
        return jax.nn.relu(y + b[None, :, None, None])

    def pool(x):
        return jnp.maximum(
            jnp.maximum(x[:, :, 0::2, 0::2], x[:, :, 0::2, 1::2]),
            jnp.maximum(x[:, :, 1::2, 0::2], x[:, :, 1::2, 1::2]))

    x = pool(conv(x, params["conv1_w"], params["conv1_b"]))
    x = pool(conv(x, params["conv2_w"], params["conv2_b"]))
    x = x.reshape(x.shape[0], -1)
    x = jax.nn.relu(x @ params["fc1_w"] + params["fc1_b"])
    x = jax.nn.relu(x @ params["fc2_w"] + params["fc2_b"])
    return x @ params["fc3_w"] + params["fc3_b"]


if __name__ == "__main__":
    key = jax.random.PRNGKey(0)
    k_param, k_input = jax.random.split(key)

    input_shape = (1, 32, 32)    # (channels, height, width) -- classic LeNet-5
    num_classes = 10
    batch = 2

    params = init_lenet5_params(k_param, input_shape, num_classes)
    kparams = prepare_lenet5_params(params, input_shape, num_classes)
    x = jax.random.normal(k_input, (batch,) + input_shape, dtype=jnp.float32)

    fwd = jax.jit(functools.partial(lenet5_forward, num_classes=num_classes))
    logits = fwd(kparams, x)
    jax.block_until_ready(logits)

    assert logits.shape == (batch, num_classes), logits.shape
    assert logits.dtype == jnp.float32

    # bf16-matmul kernels vs f32 reference: loose tolerance
    ref = _ref_forward(params, x)
    max_err = float(jnp.max(jnp.abs(logits - ref)))
    assert max_err < 5e-2, f"max abs err vs reference: {max_err}"

    print("KERNEL_OK")
</pallas_src>

<mosaic_0001>
module attributes {stable_mosaic.version = 11 : i64} {
  func.func @_conv_relu_pool_kernel(%arg0: i32, %arg1: memref<4x400x25xbf16, #tpu.memory_space<vmem>>, %arg2: memref<25x128xbf16, #tpu.memory_space<vmem>>, %arg3: memref<1x128xf32, #tpu.memory_space<vmem>>, %arg4: memref<400x128xbf16, #tpu.memory_space<vmem>>) attributes {dimension_semantics = [#tpu.dimension_semantics<parallel>], iteration_bounds = array<i64: 1>, scalar_prefetch = 0 : i64, scratch_operands = 0 : i64, tpu.core_type = #tpu.core_type<tc>, window_params = [{transform_indices = @transform_0, window_bounds = array<i64: 4, 400, 25>}, {pipeline_mode = #tpu.pipeline_mode<synchronous>, transform_indices = @transform_1, window_bounds = array<i64: 25, 128>}, {pipeline_mode = #tpu.pipeline_mode<synchronous>, transform_indices = @transform_2, window_bounds = array<i64: 1, 128>}, {transform_indices = @transform_3, window_bounds = array<i64: 400, 128>}]} {
    %c0 = arith.constant 0 : index
    %c0_0 = arith.constant 0 : index
    %0 = vector.load %arg2[%c0, %c0_0] : memref<25x128xbf16, #tpu.memory_space<vmem>>, vector<25x128xbf16>
    %c0_1 = arith.constant 0 : index
    %c0_2 = arith.constant 0 : index
    %1 = vector.load %arg3[%c0_1, %c0_2] : memref<1x128xf32, #tpu.memory_space<vmem>>, vector<1x128xf32>
    %c0_3 = arith.constant 0 : index
    %c0_4 = arith.constant 0 : index
    %c0_5 = arith.constant 0 : index
    %2 = vector.load %arg1[%c0_3, %c0_4, %c0_5] : memref<4x400x25xbf16, #tpu.memory_space<vmem>>, vector<1x400x25xbf16>
    %3 = vector.shape_cast %2 : vector<1x400x25xbf16> to vector<400x25xbf16>
    %cst = arith.constant dense<0.000000e+00> : vector<400x128xf32>
    %4 = tpu.matmul %3, %0, %cst {dimension_numbers = #tpu.dot_dimension_numbers<[1], [0], [0], [1], [0, 0, 1, 1], [], []>} : vector<400x25xbf16>, vector<25x128xbf16>, vector<400x128xf32> -> vector<400x128xf32>
    %5 = vector.broadcast %1 : vector<1x128xf32> to vector<400x128xf32>
    %6 = arith.addf %4, %5 : vector<400x128xf32>
    %cst_6 = arith.constant 0.000000e+00 : f32
    %7 = vector.broadcast %cst_6 : f32 to vector<400x128xf32>
    %8 = arith.maximumf %6, %7 : vector<400x128xf32>
    %c1 = arith.constant 1 : index
    %c0_7 = arith.constant 0 : index
    %c0_8 = arith.constant 0 : index
    %9 = vector.load %arg1[%c1, %c0_7, %c0_8] : memref<4x400x25xbf16, #tpu.memory_space<vmem>>, vector<1x400x25xbf16>
    %10 = vector.shape_cast %9 : vector<1x400x25xbf16> to vector<400x25xbf16>
    %cst_9 = arith.constant dense<0.000000e+00> : vector<400x128xf32>
    %11 = tpu.matmul %10, %0, %cst_9 {dimension_numbers = #tpu.dot_dimension_numbers<[1], [0], [0], [1], [0, 0, 1, 1], [], []>} : vector<400x25xbf16>, vector<25x128xbf16>, vector<400x128xf32> -> vector<400x128xf32>
    %12 = vector.broadcast %1 : vector<1x128xf32> to vector<400x128xf32>
    %13 = arith.addf %11, %12 : vector<400x128xf32>
    %cst_10 = arith.constant 0.000000e+00 : f32
    %14 = vector.broadcast %cst_10 : f32 to vector<400x128xf32>
    %15 = arith.maximumf %13, %14 : vector<400x128xf32>
    %16 = arith.maximumf %8, %15 : vector<400x128xf32>
    %c2 = arith.constant 2 : index
    %c0_11 = arith.constant 0 : index
    %c0_12 = arith.constant 0 : index
    %17 = vector.load %arg1[%c2, %c0_11, %c0_12] : memref<4x400x25xbf16, #tpu.memory_space<vmem>>, vector<1x400x25xbf16>
    %18 = vector.shape_cast %17 : vector<1x400x25xbf16> to vector<400x25xbf16>
    %cst_13 = arith.constant dense<0.000000e+00> : vector<400x128xf32>
    %19 = tpu.matmul %18, %0, %cst_13 {dimension_numbers = #tpu.dot_dimension_numbers<[1], [0], [0], [1], [0, 0, 1, 1], [], []>} : vector<400x25xbf16>, vector<25x128xbf16>, vector<400x128xf32> -> vector<400x128xf32>
    %20 = vector.broadcast %1 : vector<1x128xf32> to vector<400x128xf32>
    %21 = arith.addf %19, %20 : vector<400x128xf32>
    %cst_14 = arith.constant 0.000000e+00 : f32
    %22 = vector.broadcast %cst_14 : f32 to vector<400x128xf32>
    %23 = arith.maximumf %21, %22 : vector<400x128xf32>
    %c3 = arith.constant 3 : index
    %c0_15 = arith.constant 0 : index
    %c0_16 = arith.constant 0 : index
    %24 = vector.load %arg1[%c3, %c0_15, %c0_16] : memref<4x400x25xbf16, #tpu.memory_space<vmem>>, vector<1x400x25xbf16>
    %25 = vector.shape_cast %24 : vector<1x400x25xbf16> to vector<400x25xbf16>
    %cst_17 = arith.constant dense<0.000000e+00> : vector<400x128xf32>
    %26 = tpu.matmul %25, %0, %cst_17 {dimension_numbers = #tpu.dot_dimension_numbers<[1], [0], [0], [1], [0, 0, 1, 1], [], []>} : vector<400x25xbf16>, vector<25x128xbf16>, vector<400x128xf32> -> vector<400x128xf32>
    %27 = vector.broadcast %1 : vector<1x128xf32> to vector<400x128xf32>
    %28 = arith.addf %26, %27 : vector<400x128xf32>
    %cst_18 = arith.constant 0.000000e+00 : f32
    %29 = vector.broadcast %cst_18 : f32 to vector<400x128xf32>
    %30 = arith.maximumf %28, %29 : vector<400x128xf32>
    %31 = arith.maximumf %23, %30 : vector<400x128xf32>
    %32 = arith.maximumf %16, %31 : vector<400x128xf32>
    %33 = arith.truncf %32 : vector<400x128xf32> to vector<400x128xbf16>
    %c0_19 = arith.constant 0 : index
    %c0_20 = arith.constant 0 : index
    %34 = vector.load %arg4[%c0_19, %c0_20] : memref<400x128xbf16, #tpu.memory_space<vmem>>, vector<400x128xbf16>
    tpu.vector_store %arg4[%c0_19, %c0_20], %33 {strides = array<i32>} : memref<400x128xbf16, #tpu.memory_space<vmem>>, vector<400x128xbf16>,
    return
  }
  func.func @transform_0(%arg0: i32) -> (i32, i32, i32) {
    %c0_i32 = arith.constant 0 : i32
    %c0_i32_0 = arith.constant 0 : i32
    %c0_i32_1 = arith.constant 0 : i32
    return %c0_i32, %arg0, %c0_i32_0 : i32, i32, i32
  }
  func.func @transform_1(%arg0: i32) -> (i32, i32) {
    %c0_i32 = arith.constant 0 : i32
    %c0_i32_0 = arith.constant 0 : i32
    %c0_i32_1 = arith.constant 0 : i32
    return %c0_i32, %c0_i32_0 : i32, i32
  }
  func.func @transform_2(%arg0: i32) -> (i32, i32) {
    %c0_i32 = arith.constant 0 : i32
    %c0_i32_0 = arith.constant 0 : i32
    %c0_i32_1 = arith.constant 0 : i32
    return %c0_i32, %c0_i32_0 : i32, i32
  }
  func.func @transform_3(%arg0: i32) -> (i32, i32) {
    %c0_i32 = arith.constant 0 : i32
    %c0_i32_0 = arith.constant 0 : i32
    return %arg0, %c0_i32 : i32, i32
  }
}

module attributes {stable_mosaic.version = 11 : i64} {
  func.func @_conv_relu_pool_kernel(%arg0: i32, %arg1: memref<4x64x150xbf16, #tpu.memory_space<vmem>>, %arg2: memref<150x128xbf16, #tpu.memory_space<vmem>>, %arg3: memref<1x128xf32, #tpu.memory_space<vmem>>, %arg4: memref<64x128xbf16, #tpu.memory_space<vmem>>) attributes {dimension_semantics = [#tpu.dimension_semantics<parallel>], iteration_bounds = array<i64: 1>, scalar_prefetch = 0 : i64, scratch_operands = 0 : i64, tpu.core_type = #tpu.core_type<tc>, window_params = [{transform_indices = @transform_0, window_bounds = array<i64: 4, 64, 150>}, {pipeline_mode = #tpu.pipeline_mode<synchronous>, transform_indices = @transform_1, window_bounds = array<i64: 150, 128>}, {pipeline_mode = #tpu.pipeline_mode<synchronous>, transform_indices = @transform_2, window_bounds = array<i64: 1, 128>}, {transform_indices = @transform_3, window_bounds = array<i64: 64, 128>}]} {
    %c0 = arith.constant 0 : index
    %c0_0 = arith.constant 0 : index
    %0 = vector.load %arg2[%c0, %c0_0] : memref<150x128xbf16, #tpu.memory_space<vmem>>, vector<150x128xbf16>
    %c0_1 = arith.constant 0 : index
    %c0_2 = arith.constant 0 : index
    %1 = vector.load %arg3[%c0_1, %c0_2] : memref<1x128xf32, #tpu.memory_space<vmem>>, vector<1x128xf32>
    %c0_3 = arith.constant 0 : index
    %c0_4 = arith.constant 0 : index
    %c0_5 = arith.constant 0 : index
    %2 = vector.load %arg1[%c0_3, %c0_4, %c0_5] : memref<4x64x150xbf16, #tpu.memory_space<vmem>>, vector<1x64x150xbf16>
    %3 = vector.shape_cast %2 : vector<1x64x150xbf16> to vector<64x150xbf16>
    %cst = arith.constant dense<0.000000e+00> : vector<64x128xf32>
    %4 = tpu.matmul %3, %0, %cst {dimension_numbers = #tpu.dot_dimension_numbers<[1], [0], [0], [1], [0, 0, 1, 1], [], []>} : vector<64x150xbf16>, vector<150x128xbf16>, vector<64x128xf32> -> vector<64x128xf32>
    %5 = vector.broadcast %1 : vector<1x128xf32> to vector<64x128xf32>
    %6 = arith.addf %4, %5 : vector<64x128xf32>
    %cst_6 = arith.constant 0.000000e+00 : f32
    %7 = vector.broadcast %cst_6 : f32 to vector<64x128xf32>
    %8 = arith.maximumf %6, %7 : vector<64x128xf32>
    %c1 = arith.constant 1 : index
    %c0_7 = arith.constant 0 : index
    %c0_8 = arith.constant 0 : index
    %9 = vector.load %arg1[%c1, %c0_7, %c0_8] : memref<4x64x150xbf16, #tpu.memory_space<vmem>>, vector<1x64x150xbf16>
    %10 = vector.shape_cast %9 : vector<1x64x150xbf16> to vector<64x150xbf16>
    %cst_9 = arith.constant dense<0.000000e+00> : vector<64x128xf32>
    %11 = tpu.matmul %10, %0, %cst_9 {dimension_numbers = #tpu.dot_dimension_numbers<[1], [0], [0], [1], [0, 0, 1, 1], [], []>} : vector<64x150xbf16>, vector<150x128xbf16>, vector<64x128xf32> -> vector<64x128xf32>
    %12 = vector.broadcast %1 : vector<1x128xf32> to vector<64x128xf32>
    %13 = arith.addf %11, %12 : vector<64x128xf32>
    %cst_10 = arith.constant 0.000000e+00 : f32
    %14 = vector.broadcast %cst_10 : f32 to vector<64x128xf32>
    %15 = arith.maximumf %13, %14 : vector<64x128xf32>
    %16 = arith.maximumf %8, %15 : vector<64x128xf32>
    %c2 = arith.constant 2 : index
    %c0_11 = arith.constant 0 : index
    %c0_12 = arith.constant 0 : index
    %17 = vector.load %arg1[%c2, %c0_11, %c0_12] : memref<4x64x150xbf16, #tpu.memory_space<vmem>>, vector<1x64x150xbf16>
    %18 = vector.shape_cast %17 : vector<1x64x150xbf16> to vector<64x150xbf16>
    %cst_13 = arith.constant dense<0.000000e+00> : vector<64x128xf32>
    %19 = tpu.matmul %18, %0, %cst_13 {dimension_numbers = #tpu.dot_dimension_numbers<[1], [0], [0], [1], [0, 0, 1, 1], [], []>} : vector<64x150xbf16>, vector<150x128xbf16>, vector<64x128xf32> -> vector<64x128xf32>
    %20 = vector.broadcast %1 : vector<1x128xf32> to vector<64x128xf32>
    %21 = arith.addf %19, %20 : vector<64x128xf32>
    %cst_14 = arith.constant 0.000000e+00 : f32
    %22 = vector.broadcast %cst_14 : f32 to vector<64x128xf32>
    %23 = arith.maximumf %21, %22 : vector<64x128xf32>
    %c3 = arith.constant 3 : index
    %c0_15 = arith.constant 0 : index
    %c0_16 = arith.constant 0 : index
    %24 = vector.load %arg1[%c3, %c0_15, %c0_16] : memref<4x64x150xbf16, #tpu.memory_space<vmem>>, vector<1x64x150xbf16>
    %25 = vector.shape_cast %24 : vector<1x64x150xbf16> to vector<64x150xbf16>
    %cst_17 = arith.constant dense<0.000000e+00> : vector<64x128xf32>
    %26 = tpu.matmul %25, %0, %cst_17 {dimension_numbers = #tpu.dot_dimension_numbers<[1], [0], [0], [1], [0, 0, 1, 1], [], []>} : vector<64x150xbf16>, vector<150x128xbf16>, vector<64x128xf32> -> vector<64x128xf32>
    %27 = vector.broadcast %1 : vector<1x128xf32> to vector<64x128xf32>
    %28 = arith.addf %26, %27 : vector<64x128xf32>
    %cst_18 = arith.constant 0.000000e+00 : f32
    %29 = vector.broadcast %cst_18 : f32 to vector<64x128xf32>
    %30 = arith.maximumf %28, %29 : vector<64x128xf32>
    %31 = arith.maximumf %23, %30 : vector<64x128xf32>
    %32 = arith.maximumf %16, %31 : vector<64x128xf32>
    %33 = arith.truncf %32 : vector<64x128xf32> to vector<64x128xbf16>
    %c0_19 = arith.constant 0 : index
    %c0_20 = arith.constant 0 : index
    %34 = vector.load %arg4[%c0_19, %c0_20] : memref<64x128xbf16, #tpu.memory_space<vmem>>, vector<64x128xbf16>
    tpu.vector_store %arg4[%c0_19, %c0_20], %33 {strides = array<i32>} : memref<64x128xbf16, #tpu.memory_space<vmem>>, vector<64x128xbf16>,
    return
  }
  func.func @transform_0(%arg0: i32) -> (i32, i32, i32) {
    %c0_i32 = arith.constant 0 : i32
    %c0_i32_0 = arith.constant 0 : i32
    %c0_i32_1 = arith.constant 0 : i32
    return %c0_i32, %arg0, %c0_i32_0 : i32, i32, i32
  }
  func.func @transform_1(%arg0: i32) -> (i32, i32) {
    %c0_i32 = arith.constant 0 : i32
    %c0_i32_0 = arith.constant 0 : i32
    %c0_i32_1 = arith.constant 0 : i32
    return %c0_i32, %c0_i32_0 : i32, i32
  }
  func.func @transform_2(%arg0: i32) -> (i32, i32) {
    %c0_i32 = arith.constant 0 : i32
    %c0_i32_0 = arith.constant 0 : i32
    %c0_i32_1 = arith.constant 0 : i32
    return %c0_i32, %c0_i32_0 : i32, i32
  }
  func.func @transform_3(%arg0: i32) -> (i32, i32) {
    %c0_i32 = arith.constant 0 : i32
    %c0_i32_0 = arith.constant 0 : i32
    return %arg0, %c0_i32 : i32, i32
  }
}

module attributes {stable_mosaic.version = 11 : i64} {
  func.func @_mlp_kernel(%arg0: memref<2x400xbf16, #tpu.memory_space<vmem>>, %arg1: memref<400x128xbf16, #tpu.memory_space<vmem>>, %arg2: memref<1x128xf32, #tpu.memory_space<vmem>>, %arg3: memref<128x128xbf16, #tpu.memory_space<vmem>>, %arg4: memref<1x128xf32, #tpu.memory_space<vmem>>, %arg5: memref<128x128xbf16, #tpu.memory_space<vmem>>, %arg6: memref<1x128xf32, #tpu.memory_space<vmem>>, %arg7: memref<2x128xf32, #tpu.memory_space<vmem>>) attributes {dimension_semantics = [], scalar_prefetch = 0 : i64, scratch_operands = 0 : i64, tpu.core_type = #tpu.core_type<tc>} {
    %c0 = arith.constant 0 : index
    %c0_0 = arith.constant 0 : index
    %0 = vector.load %arg0[%c0, %c0_0] : memref<2x400xbf16, #tpu.memory_space<vmem>>, vector<2x400xbf16>
    %c0_1 = arith.constant 0 : index
    %c0_2 = arith.constant 0 : index
    %1 = vector.load %arg1[%c0_1, %c0_2] : memref<400x128xbf16, #tpu.memory_space<vmem>>, vector<400x128xbf16>
    %cst = arith.constant dense<0.000000e+00> : vector<2x128xf32>
    %2 = tpu.matmul %0, %1, %cst {dimension_numbers = #tpu.dot_dimension_numbers<[1], [0], [0], [1], [0, 0, 1, 1], [], []>} : vector<2x400xbf16>, vector<400x128xbf16>, vector<2x128xf32> -> vector<2x128xf32>
    %c0_3 = arith.constant 0 : index
    %c0_4 = arith.constant 0 : index
    %3 = vector.load %arg2[%c0_3, %c0_4] : memref<1x128xf32, #tpu.memory_space<vmem>>, vector<1x128xf32>
    %4 = vector.broadcast %3 : vector<1x128xf32> to vector<2x128xf32>
    %5 = arith.addf %2, %4 : vector<2x128xf32>
    %cst_5 = arith.constant 0.000000e+00 : f32
    %6 = vector.broadcast %cst_5 : f32 to vector<2x128xf32>
    %7 = arith.maximumf %5, %6 : vector<2x128xf32>
    %8 = arith.truncf %7 : vector<2x128xf32> to vector<2x128xbf16>
    %c0_6 = arith.constant 0 : index
    %c0_7 = arith.constant 0 : index
    %9 = vector.load %arg3[%c0_6, %c0_7] : memref<128x128xbf16, #tpu.memory_space<vmem>>, vector<128x128xbf16>
    %cst_8 = arith.constant dense<0.000000e+00> : vector<2x128xf32>
    %10 = tpu.matmul %8, %9, %cst_8 {dimension_numbers = #tpu.dot_dimension_numbers<[1], [0], [0], [1], [0, 0, 1, 1], [], []>} : vector<2x128xbf16>, vector<128x128xbf16>, vector<2x128xf32> -> vector<2x128xf32>
    %c0_9 = arith.constant 0 : index
    %c0_10 = arith.constant 0 : index
    %11 = vector.load %arg4[%c0_9, %c0_10] : memref<1x128xf32, #tpu.memory_space<vmem>>, vector<1x128xf32>
    %12 = vector.broadcast %11 : vector<1x128xf32> to vector<2x128xf32>
    %13 = arith.addf %10, %12 : vector<2x128xf32>
    %cst_11 = arith.constant 0.000000e+00 : f32
    %14 = vector.broadcast %cst_11 : f32 to vector<2x128xf32>
    %15 = arith.maximumf %13, %14 : vector<2x128xf32>
    %16 = arith.truncf %15 : vector<2x128xf32> to vector<2x128xbf16>
    %c0_12 = arith.constant 0 : index
    %c0_13 = arith.constant 0 : index
    %17 = vector.load %arg5[%c0_12, %c0_13] : memref<128x128xbf16, #tpu.memory_space<vmem>>, vector<128x128xbf16>
    %cst_14 = arith.constant dense<0.000000e+00> : vector<2x128xf32>
    %18 = tpu.matmul %16, %17, %cst_14 {dimension_numbers = #tpu.dot_dimension_numbers<[1], [0], [0], [1], [0, 0, 1, 1], [], []>} : vector<2x128xbf16>, vector<128x128xbf16>, vector<2x128xf32> -> vector<2x128xf32>
    %c0_15 = arith.constant 0 : index
    %c0_16 = arith.constant 0 : index
    %19 = vector.load %arg6[%c0_15, %c0_16] : memref<1x128xf32, #tpu.memory_space<vmem>>, vector<1x128xf32>
    %20 = vector.broadcast %19 : vector<1x128xf32> to vector<2x128xf32>
    %21 = arith.addf %18, %20 : vector<2x128xf32>
    %c0_17 = arith.constant 0 : index
    %c0_18 = arith.constant 0 : index
    %22 = vector.load %arg7[%c0_17, %c0_18] : memref<2x128xf32, #tpu.memory_space<vmem>>, vector<2x128xf32>
    tpu.vector_store %arg7[%c0_17, %c0_18], %21 {strides = array<i32>} : memref<2x128xf32, #tpu.memory_space<vmem>>, vector<2x128xf32>,
    return
  }
}

</mosaic_0001>

<bundles_post_ra>
// kernel: lenet5_forward.3
= control target key start
LH: loop header
LB: loop body
LE: loop exit
PB: predicated region body
PF: predicated region fallthrough
CT: control target
= control target key end

     0   :  { %vm285_vm0 = vcmask 1043456   ;;  %vm286_vm1 = vcmask 1044480   ;;  %v2947_v2 = vmov 65535   ;;  %vm209_vm2 = vcmask 203776   ;;  %s3662_s1 = inlined_call_operand.vmem [shape: bf16[25,128], index: 1, kind: input, shape index: {}]   ;;  %s3663_s2 = inlined_call_operand.vmem [shape: f32[1,128], index: 2, kind: input, shape index: {}]   ;;  %s3664_s0 = inlined_call_operand.vmem [shape: bf16[4,400,25], index: 0, kind: input, shape index: {}]   ;;  %s3665_s3 = inlined_call_operand.vmem [shape: bf16[400,128], index: 3, kind: output, shape index: {}]  }
   0x1   :  { %v2141_v0 = vld [vmem:[%s3662_s1 + $0x8] sm:$0xf]  ;;  %v2694_v1 = vld [vmem:[%s3662_s1 + $0x8] sm:$0x10]  ;;  %v287_v3 = vsel %vm285_vm0, 4294967295, %v2947_v2  ;;  %v2693_v7 = vld [vmem:[%s3662_s1] sm:$0xff] }
   0x2   :  { %v2142_v4 = vor.u32 %v2694_v1, %v2141_v0  ;;  %v288_v5 = vsel %vm286_vm1, %v287_v3, 0  ;;  %v2695_v8 = vld [vmem:[%s3664_s0] sm:$0xff]  ;;  %v2720_v9 = vld [vmem:[%s3664_s0 + $0xc8] sm:$0xff]  ;;  %v2745_v10 = vld [vmem:[%s3664_s0 + $0x190] sm:$0xff] }
   0x3   :  { %v2770_v11 = vld [vmem:[%s3664_s0 + $0x258] sm:$0xff]  ;;  %v2696_v12 = vld [vmem:[%s3664_s0 + $0x8] sm:$0xff]  ;;  %v2721_v13 = vld [vmem:[%s3664_s0 + $0xd0] sm:$0xff] }
   0x4   :  { %v290_v6 = vand.u32 %v2142_v4, %v288_v5  ;;  %v2746_v14 = vld [vmem:[%s3664_s0 + $0x198] sm:$0xff]  ;;  %v2771_v15 = vld [vmem:[%s3664_s0 + $0x260] sm:$0xff]  ;;  %v2697_v16 = vld [vmem:[%s3664_s0 + $0x10] sm:$0xff] }
   0x5   :  { %v2722_v17 = vld [vmem:[%s3664_s0 + $0xd8] sm:$0xff]  ;;  %v2747_v18 = vld [vmem:[%s3664_s0 + $0x1a0] sm:$0xff]  ;;  %v2772_v19 = vld [vmem:[%s3664_s0 + $0x268] sm:$0xff] }
   0x6   :  { %298 = vmatpush.bf16.msra.mxu0 %v290_v6  ;;  %733 = vmatpush.bf16.msra.mxu1 %v290_v6  ;;  %v2698_v20 = vld [vmem:[%s3664_s0 + $0x18] sm:$0xff]  ;;  %v2723_v21 = vld [vmem:[%s3664_s0 + $0xe0] sm:$0xff]  ;;  %v2748_v22 = vld [vmem:[%s3664_s0 + $0x1a8] sm:$0xff] }
   0x7   :  { %1218 = vmatpush.bf16.msra.mxu2 %v290_v6  ;;  %1653 = vmatpush.bf16.msra.mxu3 %v290_v6  ;;  %v2773_v23 = vld [vmem:[%s3664_s0 + $0x270] sm:$0xff]  ;;  %v2699_v24 = vld [vmem:[%s3664_s0 + $0x20] sm:$0xff]  ;;  %v2724_v25 = vld [vmem:[%s3664_s0 + $0xe8] sm:$0xff] }
   0x8   :  { %v2749_v26 = vld [vmem:[%s3664_s0 + $0x1b0] sm:$0xff]  ;;  %v2774_v27 = vld [vmem:[%s3664_s0 + $0x278] sm:$0xff]  ;;  %v2700_v28 = vld [vmem:[%s3664_s0 + $0x28] sm:$0xff] }
   0x9   :  { %v2725_v29 = vld [vmem:[%s3664_s0 + $0xf0] sm:$0xff]  ;;  %v2750_v30 = vld [vmem:[%s3664_s0 + $0x1b8] sm:$0xff]  ;;  %v2775_v31 = vld [vmem:[%s3664_s0 + $0x280] sm:$0xff] }
   0xa   :  { %299 = vmatpush.bf16.msra.mxu0 %v2693_v7  ;;  %734 = vmatpush.bf16.msra.mxu1 %v2693_v7  ;;  %v2701_v32 = vld [vmem:[%s3664_s0 + $0x30] sm:$0xff]  ;;  %v2726_v33 = vld [vmem:[%s3664_s0 + $0xf8] sm:$0xff]  ;;  %v2751_v34 = vld [vmem:[%s3664_s0 + $0x1c0] sm:$0xff] }
   0xb   :  { %1219 = vmatpush.bf16.msra.mxu2 %v2693_v7  ;;  %1654 = vmatpush.bf16.msra.mxu3 %v2693_v7  ;;  %v2776_v35 = vld [vmem:[%s3664_s0 + $0x288] sm:$0xff]  ;;  %v2702_v36 = vld [vmem:[%s3664_s0 + $0x38] sm:$0xff]  ;;  %v2727_v37 = vld [vmem:[%s3664_s0 + $0x100] sm:$0xff] }
   0xc   :  { %v2752_v38 = vld [vmem:[%s3664_s0 + $0x1c8] sm:$0xff]  ;;  %v2777_v39 = vld [vmem:[%s3664_s0 + $0x290] sm:$0xff]  ;;  %v2703_v40 = vld [vmem:[%s3664_s0 + $0x40] sm:$0xff] }
   0xd   :  { %2143 = vmatmul.msk.bf16.vlgmr.msra.gmra.mxu0 %vm209_vm2, %v2695_v8  ;;  %2318 = vmatmul.msk.bf16.vlgmr.msra.gmra.mxu1 %vm209_vm2, %v2720_v9  ;;  %v2728_v41 = vld [vmem:[%s3664_s0 + $0x108] sm:$0xff]  ;;  %v2753_v44 = vld [vmem:[%s3664_s0 + $0x1d0] sm:$0xff]  ;;  %v2778_v45 = vld [vmem:[%s3664_s0 + $0x298] sm:$0xff] }
   0xe   :  { %2493 = vmatmul.msk.bf16.vlgmr.msra.gmra.mxu2 %vm209_vm2, %v2745_v10  ;;  %2668 = vmatmul.msk.bf16.vlgmr.msra.gmra.mxu3 %vm209_vm2, %v2770_v11  ;;  %v3124_v46 = vld [vmem:[%s3663_s2] ss:$0 sm:$0xff]  ;;  %v2704_v63 = vld [vmem:[%s3664_s0 + $0x48] sm:$0xff]  ;;  %v2729_v0 = vld [vmem:[%s3664_s0 + $0x110] sm:$0xff] }
   0xf   :  { %v2754_v7 = vld [vmem:[%s3664_s0 + $0x1d8] sm:$0xff]  ;;  %v2779_v8 = vld [vmem:[%s3664_s0 + $0x2a0] sm:$0xff] }
  0x1d   :  { %2144 = vmatmul.msk.bf16.gmra.mxu0 %vm209_vm2, %v2696_v12  ;;  %2319 = vmatmul.msk.bf16.gmra.mxu1 %vm209_vm2, %v2721_v13 }
  0x1e   :  { %2494 = vmatmul.msk.bf16.gmra.mxu2 %vm209_vm2, %v2746_v14  ;;  %2669 = vmatmul.msk.bf16.gmra.mxu3 %vm209_vm2, %v2771_v15 }
  0x2d   :  { %2145 = vmatmul.msk.bf16.gmra.mxu0 %vm209_vm2, %v2697_v16  ;;  %2320 = vmatmul.msk.bf16.gmra.mxu1 %vm209_vm2, %v2722_v17 }
  0x2e   :  { %2495 = vmatmul.msk.bf16.gmra.mxu2 %vm209_vm2, %v2747_v18  ;;  %2670 = vmatmul.msk.bf16.gmra.mxu3 %vm209_vm2, %v2772_v19 }
  0x3d   :  { %2146 = vmatmul.msk.bf16.gmra.mxu0 %vm209_vm2, %v2698_v20  ;;  %2321 = vmatmul.msk.bf16.gmra.mxu1 %vm209_vm2, %v2723_v21 }
  0x3e   :  { %2496 = vmatmul.msk.bf16.gmra.mxu2 %vm209_vm2, %v2748_v22  ;;  %2671 = vmatmul.msk.bf16.gmra.mxu3 %vm209_vm2, %v2773_v23 }
  0x4d   :  { %2147 = vmatmul.msk.bf16.gmra.mxu0 %vm209_vm2, %v2699_v24  ;;  %2322 = vmatmul.msk.bf16.gmra.mxu1 %vm209_vm2, %v2724_v25 }
  0x4e   :  { %2497 = vmatmul.msk.bf16.gmra.mxu2 %vm209_vm2, %v2749_v26  ;;  %2672 = vmatmul.msk.bf16.gmra.mxu3 %vm209_vm2, %v2774_v27 }
  0x5d   :  { %2148 = vmatmul.msk.bf16.gmra.mxu0 %vm209_vm2, %v2700_v28  ;;  %2323 = vmatmul.msk.bf16.gmra.mxu1 %vm209_vm2, %v2725_v29 }
  0x5e   :  { %2498 = vmatmul.msk.bf16.gmra.mxu2 %vm209_vm2, %v2750_v30  ;;  %2673 = vmatmul.msk.bf16.gmra.mxu3 %vm209_vm2, %v2775_v31 }
  0x6d   :  { %2149 = vmatmul.msk.bf16.gmra.mxu0 %vm209_vm2, %v2701_v32  ;;  %2324 = vmatmul.msk.bf16.gmra.mxu1 %vm209_vm2, %v2726_v33 }
  0x6e   :  { %2499 = vmatmul.msk.bf16.gmra.mxu2 %vm209_vm2, %v2751_v34  ;;  %2674 = vmatmul.msk.bf16.gmra.mxu3 %vm209_vm2, %v2776_v35  ;;  %v2705_v34 = vld [vmem:[%s3664_s0 + $0x50] sm:$0xff]  ;;  %v2730_v35 = vld [vmem:[%s3664_s0 + $0x118] sm:$0xff] }
  0x7d   :  { %2150 = vmatmul.msk.bf16.gmra.mxu0 %vm209_vm2, %v2702_v36  ;;  %2325 = vmatmul.msk.bf16.gmra.mxu1 %vm209_vm2, %v2727_v37 }
  0x7e   :  { %2500 = vmatmul.msk.bf16.gmra.mxu2 %vm209_vm2, %v2752_v38  ;;  %2675 = vmatmul.msk.bf16.gmra.mxu3 %vm209_vm2, %v2777_v39 }
  0x8a   :  { %v301_v42 = vpop.f32.mrf.mxu0  ;;  %v736_v43 = vpop.f32.mrf.mxu1 }
  0x8b   :  { %v302_v51 = vadd.f32 %v3124_v46, %v301_v42  ;;  %v737_v52 = vadd.f32 %v3124_v46, %v736_v43  ;;  %v2755_v42 = vld [vmem:[%s3664_s0 + $0x1e0] sm:$0xff]  ;;  %v2780_v43 = vld [vmem:[%s3664_s0 + $0x2a8] sm:$0xff] }
  0x8d   :  { %2151 = vmatmul.msk.bf16.gmra.mxu0 %vm209_vm2, %v2703_v40  ;;  %2326 = vmatmul.msk.bf16.gmra.mxu1 %vm209_vm2, %v2728_v41  ;;  %v426_v57 = vmax.f32 %v302_v51, 0.0  ;;  %v861_v58 = vmax.f32 %v737_v52, 0.0 }
  0x8e   :  { %2501 = vmatmul.msk.bf16.gmra.mxu2 %vm209_vm2, %v2753_v44  ;;  %2676 = vmatmul.msk.bf16.gmra.mxu3 %vm209_vm2, %v2778_v45 }
  0x8f   :  { %v911_v9 = vmax.f32 %v426_v57, %v861_v58 }
  0x91   :  { %v1221_v47 = vpop.f32.mrf.mxu2  ;;  %v1656_v48 = vpop.f32.mrf.mxu3 }
  0x92   :  { %v303_v49 = vpop.f32.mrf.mxu0  ;;  %v738_v50 = vpop.f32.mrf.mxu1  ;;  %v1222_v53 = vadd.f32 %v3124_v46, %v1221_v47  ;;  %v1657_v54 = vadd.f32 %v3124_v46, %v1656_v48 }
  0x93   :  { %v304_v55 = vadd.f32 %v3124_v46, %v303_v49  ;;  %v739_v56 = vadd.f32 %v3124_v46, %v738_v50 }
  0x94   :  { %v1346_v59 = vmax.f32 %v1222_v53, 0.0  ;;  %v1781_v60 = vmax.f32 %v1657_v54, 0.0 }
  0x95   :  { %v427_v1 = vmax.f32 %v304_v55, 0.0  ;;  %v862_v2 = vmax.f32 %v739_v56, 0.0 }
  0x96   :  { %v1831_v10 = vmax.f32 %v1346_v59, %v1781_v60 }
  0x97   :  { %v912_v13 = vmax.f32 %v427_v1, %v862_v2 }
  0x98   :  { %v1881_v15 = vmax.f32 %v911_v9, %v1831_v10 }
  0x99   :  { %v1223_v61 = vpop.f32.mrf.mxu2  ;;  %v1658_v62 = vpop.f32.mrf.mxu3 }
  0x9a   :  { %v1224_v3 = vadd.f32 %v3124_v46, %v1223_v61  ;;  %v1659_v4 = vadd.f32 %v3124_v46, %v1658_v62  ;;  %v306_v5 = vpop.f32.mrf.mxu0  ;;  %v741_v6 = vpop.f32.mrf.mxu1 }
  0x9b   :  { %v307_v22 = vadd.f32 %v3124_v46, %v306_v5  ;;  %v742_v23 = vadd.f32 %v3124_v46, %v741_v6  ;;  %v2706_v6 = vld [vmem:[%s3664_s0 + $0x58] sm:$0xff] }
  0x9c   :  { %v1347_v11 = vmax.f32 %v1224_v3, 0.0  ;;  %v1782_v12 = vmax.f32 %v1659_v4, 0.0 }
  0x9d   :  { %2152 = vmatmul.msk.bf16.gmra.mxu0 %vm209_vm2, %v2704_v63  ;;  %2327 = vmatmul.msk.bf16.gmra.mxu1 %vm209_vm2, %v2729_v0  ;;  %v428_v28 = vmax.f32 %v307_v22, 0.0  ;;  %v863_v29 = vmax.f32 %v742_v23, 0.0 }
  0x9e   :  { %v1832_v14 = vmax.f32 %v1347_v11, %v1782_v12  ;;  %2502 = vmatmul.msk.bf16.gmra.mxu2 %vm209_vm2, %v2754_v7  ;;  %2677 = vmatmul.msk.bf16.gmra.mxu3 %vm209_vm2, %v2779_v8  ;;  %v2731_v7 = vld [vmem:[%s3664_s0 + $0x120] sm:$0xff] }
  0x9f   :  { %v913_v44 = vmax.f32 %v428_v28, %v863_v29 }
  0xa0   :  { %v1882_v16 = vmax.f32 %v912_v13, %v1832_v14  ;;  %v2756_v14 = vld [vmem:[%s3664_s0 + $0x1e8] sm:$0xff] }
  0xa1   :  { %v1226_v17 = vpop.f32.mrf.mxu2  ;;  %v1661_v18 = vpop.f32.mrf.mxu3 }
  0xa2   :  { %v2798_v19 = vpack.c.bf16 %v1882_v16, %v1881_v15  ;;  %v308_v20 = vpop.f32.mrf.mxu0  ;;  %v743_v21 = vpop.f32.mrf.mxu1  ;;  %v1227_v24 = vadd.f32 %v3124_v46, %v1226_v17  ;;  %v1662_v25 = vadd.f32 %v3124_v46, %v1661_v18  ;;  %v2781_v15 = vld [vmem:[%s3664_s0 + $0x2b0] sm:$0xff] }
  0xa3   :  { %v309_v26 = vadd.f32 %v3124_v46, %v308_v20  ;;  %v744_v27 = vadd.f32 %v3124_v46, %v743_v21 }
  0xa4   :  { %2799 = vst [vmem:[%s3665_s3] sm:$0xff] %v2798_v19   ;;  %v1348_v30 = vmax.f32 %v1227_v24, 0.0  ;;  %v1783_v31 = vmax.f32 %v1662_v25, 0.0 }
  0xa5   :  { %v429_v36 = vmax.f32 %v309_v26, 0.0  ;;  %v864_v37 = vmax.f32 %v744_v27, 0.0 }
  0xa6   :  { %v1833_v45 = vmax.f32 %v1348_v30, %v1783_v31 }
  0xa7   :  { %v914_v49 = vmax.f32 %v429_v36, %v864_v37 }
  0xa8   :  { %v1883_v51 = vmax.f32 %v913_v44, %v1833_v45 }
  0xa9   :  { %v1228_v32 = vpop.f32.mrf.mxu2  ;;  %v1663_v33 = vpop.f32.mrf.mxu3 }
  0xaa   :  { %v1229_v38 = vadd.f32 %v3124_v46, %v1228_v32  ;;  %v1664_v39 = vadd.f32 %v3124_v46, %v1663_v33  ;;  %v311_v40 = vpop.f32.mrf.mxu0  ;;  %v746_v41 = vpop.f32.mrf.mxu1 }
  0xab   :  { %v312_v58 = vadd.f32 %v3124_v46, %v311_v40  ;;  %v747_v59 = vadd.f32 %v3124_v46, %v746_v41  ;;  %v2707_v41 = vld [vmem:[%s3664_s0 + $0x60] sm:$0xff] }
  0xac   :  { %v1349_v47 = vmax.f32 %v1229_v38, 0.0  ;;  %v1784_v48 = vmax.f32 %v1664_v39, 0.0 }
  0xad   :  { %2153 = vmatmul.msk.bf16.gmra.mxu0 %vm209_vm2, %v2705_v34  ;;  %2328 = vmatmul.msk.bf16.gmra.mxu1 %vm209_vm2, %v2730_v35  ;;  %v430_v0 = vmax.f32 %v312_v58, 0.0  ;;  %v865_v1 = vmax.f32 %v747_v59, 0.0 }
  0xae   :  { %v1834_v50 = vmax.f32 %v1349_v47, %v1784_v48  ;;  %2503 = vmatmul.msk.bf16.gmra.mxu2 %vm209_vm2, %v2755_v42  ;;  %2678 = vmatmul.msk.bf16.gmra.mxu3 %vm209_vm2, %v2780_v43  ;;  %v2732_v42 = vld [vmem:[%s3664_s0 + $0x128] sm:$0xff] }
  0xaf   :  { %v915_v16 = vmax.f32 %v430_v0, %v865_v1 }
  0xb0   :  { %v1884_v52 = vmax.f32 %v914_v49, %v1834_v50  ;;  %v2757_v50 = vld [vmem:[%s3664_s0 + $0x1f0] sm:$0xff] }
  0xb1   :  { %v1231_v53 = vpop.f32.mrf.mxu2  ;;  %v1666_v54 = vpop.f32.mrf.mxu3 }
  0xb2   :  { %v2803_v55 = vpack.c.bf16 %v1884_v52, %v1883_v51  ;;  %v313_v56 = vpop.f32.mrf.mxu0  ;;  %v748_v57 = vpop.f32.mrf.mxu1  ;;  %v1232_v60 = vadd.f32 %v3124_v46, %v1231_v53  ;;  %v1667_v61 = vadd.f32 %v3124_v46, %v1666_v54  ;;  %v2782_v51 = vld [vmem:[%s3664_s0 + $0x2b8] sm:$0xff] }
  0xb3   :  { %v314_v62 = vadd.f32 %v3124_v46, %v313_v56  ;;  %v749_v63 = vadd.f32 %v3124_v46, %v748_v57 }
  0xb4   :  { %2920 = vst [vmem:[%s3665_s3 + $0x8] sm:$0xff] %v2803_v55   ;;  %v1350_v2 = vmax.f32 %v1232_v60, 0.0  ;;  %v1785_v3 = vmax.f32 %v1667_v61, 0.0 }
  0xb5   :  { %v431_v8 = vmax.f32 %v314_v62, 0.0  ;;  %v866_v9 = vmax.f32 %v749_v63, 0.0 }
  0xb6   :  { %v1835_v17 = vmax.f32 %v1350_v2, %v1785_v3 }
  0xb7   :  { %v916_v20 = vmax.f32 %v431_v8, %v866_v9 }
  0xb8   :  { %v1885_v22 = vmax.f32 %v915_v16, %v1835_v17 }
  0xb9   :  { %v1233_v4 = vpop.f32.mrf.mxu2  ;;  %v1668_v5 = vpop.f32.mrf.mxu3 }
  0xba   :  { %v1234_v10 = vadd.f32 %v3124_v46, %v1233_v4  ;;  %v1669_v11 = vadd.f32 %v3124_v46, %v1668_v5  ;;  %v316_v12 = vpop.f32.mrf.mxu0  ;;  %v751_v13 = vpop.f32.mrf.mxu1 }
  0xbb   :  { %v317_v29 = vadd.f32 %v3124_v46, %v316_v12  ;;  %v752_v30 = vadd.f32 %v3124_v46, %v751_v13  ;;  %v2708_v13 = vld [vmem:[%s3664_s0 + $0x68] sm:$0xff] }
  0xbc   :  { %v1351_v18 = vmax.f32 %v1234_v10, 0.0  ;;  %v1786_v19 = vmax.f32 %v1669_v11, 0.0 }
  0xbd   :  { %2154 = vmatmul.msk.bf16.gmra.mxu0 %vm209_vm2, %v2706_v6  ;;  %2329 = vmatmul.msk.bf16.gmra.mxu1 %vm209_vm2, %v2731_v7  ;;  %v432_v35 = vmax.f32 %v317_v29, 0.0  ;;  %v867_v36 = vmax.f32 %v752_v30, 0.0 }
  0xbe   :  { %v1836_v21 = vmax.f32 %v1351_v18, %v1786_v19  ;;  %2504 = vmatmul.msk.bf16.gmra.mxu2 %vm209_vm2, %v2756_v14  ;;  %2679 = vmatmul.msk.bf16.gmra.mxu3 %vm209_vm2, %v2781_v15  ;;  %v2733_v14 = vld [vmem:[%s3664_s0 + $0x130] sm:$0xff] }
  0xbf   :  { %v917_v52 = vmax.f32 %v432_v35, %v867_v36 }
  0xc0   :  { %v1886_v23 = vmax.f32 %v916_v20, %v1836_v21  ;;  %v2758_v21 = vld [vmem:[%s3664_s0 + $0x1f8] sm:$0xff] }
  0xc1   :  { %v1236_v24 = vpop.f32.mrf.mxu2  ;;  %v1671_v25 = vpop.f32.mrf.mxu3 }
  0xc2   :  { %v2808_v26 = vpack.c.bf16 %v1886_v23, %v1885_v22  ;;  %v318_v27 = vpop.f32.mrf.mxu0  ;;  %v753_v28 = vpop.f32.mrf.mxu1  ;;  %v1237_v31 = vadd.f32 %v3124_v46, %v1236_v24  ;;  %v1672_v32 = vadd.f32 %v3124_v46, %v1671_v25  ;;  %v2783_v22 = vld [vmem:[%s3664_s0 + $0x2c0] sm:$0xff] }
  0xc3   :  { %v319_v33 = vadd.f32 %v3124_v46, %v318_v27  ;;  %v754_v34 = vadd.f32 %v3124_v46, %v753_v28 }
  0xc4   :  { %2921 = vst [vmem:[%s3665_s3 + $0x10] sm:$0xff] %v2808_v26   ;;  %v1352_v37 = vmax.f32 %v1237_v31, 0.0  ;;  %v1787_v38 = vmax.f32 %v1672_v32, 0.0 }
  0xc5   :  { %v433_v43 = vmax.f32 %v319_v33, 0.0  ;;  %v868_v44 = vmax.f32 %v754_v34, 0.0 }
  0xc6   :  { %v1837_v53 = vmax.f32 %v1352_v37, %v1787_v38 }
  0xc7   :  { %v918_v56 = vmax.f32 %v433_v43, %v868_v44 }
  0xc8   :  { %v1887_v58 = vmax.f32 %v917_v52, %v1837_v53 }
  0xc9   :  { %v1238_v39 = vpop.f32.mrf.mxu2  ;;  %v1673_v40 = vpop.f32.mrf.mxu3 }
  0xca   :  { %v1239_v45 = vadd.f32 %v3124_v46, %v1238_v39  ;;  %v1674_v47 = vadd.f32 %v3124_v46, %v1673_v40  ;;  %v321_v48 = vpop.f32.mrf.mxu0  ;;  %v756_v49 = vpop.f32.mrf.mxu1 }
  0xcb   :  { %v322_v1 = vadd.f32 %v3124_v46, %v321_v48  ;;  %v757_v2 = vadd.f32 %v3124_v46, %v756_v49  ;;  %v2709_v49 = vld [vmem:[%s3664_s0 + $0x70] sm:$0xff] }
  0xcc   :  { %v1353_v54 = vmax.f32 %v1239_v45, 0.0  ;;  %v1788_v55 = vmax.f32 %v1674_v47, 0.0 }
  0xcd   :  { %2155 = vmatmul.msk.bf16.gmra.mxu0 %vm209_vm2, %v2707_v41  ;;  %2330 = vmatmul.msk.bf16.gmra.mxu1 %vm209_vm2, %v2732_v42  ;;  %v434_v7 = vmax.f32 %v322_v1, 0.0  ;;  %v869_v8 = vmax.f32 %v757_v2, 0.0 }
  0xce   :  { %v1838_v57 = vmax.f32 %v1353_v54, %v1788_v55  ;;  %2505 = vmatmul.msk.bf16.gmra.mxu2 %vm209_vm2, %v2757_v50  ;;  %2680 = vmatmul.msk.bf16.gmra.mxu3 %vm209_vm2, %v2782_v51  ;;  %v2734_v50 = vld [vmem:[%s3664_s0 + $0x138] sm:$0xff] }
  0xcf   :  { %v919_v23 = vmax.f32 %v434_v7, %v869_v8 }
  0xd0   :  { %v1888_v59 = vmax.f32 %v918_v56, %v1838_v57  ;;  %v2759_v57 = vld [vmem:[%s3664_s0 + $0x200] sm:$0xff] }
  0xd1   :  { %v1241_v60 = vpop.f32.mrf.mxu2  ;;  %v1676_v61 = vpop.f32.mrf.mxu3 }
  0xd2   :  { %v2813_v62 = vpack.c.bf16 %v1888_v59, %v1887_v58  ;;  %v323_v63 = vpop.f32.mrf.mxu0  ;;  %v758_v0 = vpop.f32.mrf.mxu1  ;;  %v1242_v3 = vadd.f32 %v3124_v46, %v1241_v60  ;;  %v1677_v4 = vadd.f32 %v3124_v46, %v1676_v61  ;;  %v2784_v58 = vld [vmem:[%s3664_s0 + $0x2c8] sm:$0xff] }
  0xd3   :  { %v324_v5 = vadd.f32 %v3124_v46, %v323_v63  ;;  %v759_v6 = vadd.f32 %v3124_v46, %v758_v0 }
  0xd4   :  { %2922 = vst [vmem:[%s3665_s3 + $0x18] sm:$0xff] %v2813_v62   ;;  %v1354_v9 = vmax.f32 %v1242_v3, 0.0  ;;  %v1789_v10 = vmax.f32 %v1677_v4, 0.0 }
  0xd5   :  { %v435_v15 = vmax.f32 %v324_v5, 0.0  ;;  %v870_v16 = vmax.f32 %v759_v6, 0.0 }
  0xd6   :  { %v1839_v24 = vmax.f32 %v1354_v9, %v1789_v10 }
  0xd7   :  { %v920_v27 = vmax.f32 %v435_v15, %v870_v16 }
  0xd8   :  { %v1889_v29 = vmax.f32 %v919_v23, %v1839_v24 }
  0xd9   :  { %v1243_v11 = vpop.f32.mrf.mxu2  ;;  %v1678_v12 = vpop.f32.mrf.mxu3 }
  0xda   :  { %v1244_v17 = vadd.f32 %v3124_v46, %v1243_v11  ;;  %v1679_v18 = vadd.f32 %v3124_v46, %v1678_v12  ;;  %v326_v19 = vpop.f32.mrf.mxu0  ;;  %v761_v20 = vpop.f32.mrf.mxu1 }
  0xdb   :  { %v327_v36 = vadd.f32 %v3124_v46, %v326_v19  ;;  %v762_v37 = vadd.f32 %v3124_v46, %v761_v20  ;;  %v2710_v20 = vld [vmem:[%s3664_s0 + $0x78] sm:$0xff] }
  0xdc   :  { %v1355_v25 = vmax.f32 %v1244_v17, 0.0  ;;  %v1790_v26 = vmax.f32 %v1679_v18, 0.0 }
  0xdd   :  { %2156 = vmatmul.msk.bf16.gmra.mxu0 %vm209_vm2, %v2708_v13  ;;  %2331 = vmatmul.msk.bf16.gmra.mxu1 %vm209_vm2, %v2733_v14  ;;  %v436_v42 = vmax.f32 %v327_v36, 0.0  ;;  %v871_v43 = vmax.f32 %v762_v37, 0.0 }
  0xde   :  { %v1840_v28 = vmax.f32 %v1355_v25, %v1790_v26  ;;  %2506 = vmatmul.msk.bf16.gmra.mxu2 %vm209_vm2, %v2758_v21  ;;  %2681 = vmatmul.msk.bf16.gmra.mxu3 %vm209_vm2, %v2783_v22  ;;  %v2735_v21 = vld [vmem:[%s3664_s0 + $0x140] sm:$0xff] }
  0xdf   :  { %v921_v59 = vmax.f32 %v436_v42, %v871_v43 }
  0xe0   :  { %v1890_v30 = vmax.f32 %v920_v27, %v1840_v28  ;;  %v2760_v28 = vld [vmem:[%s3664_s0 + $0x208] sm:$0xff] }
  0xe1   :  { %v1246_v31 = vpop.f32.mrf.mxu2  ;;  %v1681_v32 = vpop.f32.mrf.mxu3 }
  0xe2   :  { %v2818_v33 = vpack.c.bf16 %v1890_v30, %v1889_v29  ;;  %v328_v34 = vpop.f32.mrf.mxu0  ;;  %v763_v35 = vpop.f32.mrf.mxu1  ;;  %v1247_v38 = vadd.f32 %v3124_v46, %v1246_v31  ;;  %v1682_v39 = vadd.f32 %v3124_v46, %v1681_v32  ;;  %v2785_v29 = vld [vmem:[%s3664_s0 + $0x2d0] sm:$0xff] }
  0xe3   :  { %v329_v40 = vadd.f32 %v3124_v46, %v328_v34  ;;  %v764_v41 = vadd.f32 %v3124_v46, %v763_v35 }
  0xe4   :  { %2923 = vst [vmem:[%s3665_s3 + $0x20] sm:$0xff] %v2818_v33   ;;  %v1356_v44 = vmax.f32 %v1247_v38, 0.0  ;;  %v1791_v45 = vmax.f32 %v1682_v39, 0.0 }
  0xe5   :  { %v437_v51 = vmax.f32 %v329_v40, 0.0  ;;  %v872_v52 = vmax.f32 %v764_v41, 0.0 }
  0xe6   :  { %v1841_v60 = vmax.f32 %v1356_v44, %v1791_v45 }
  0xe7   :  { %v922_v63 = vmax.f32 %v437_v51, %v872_v52 }
  0xe8   :  { %v1891_v1 = vmax.f32 %v921_v59, %v1841_v60 }
  0xe9   :  { %v1248_v47 = vpop.f32.mrf.mxu2  ;;  %v1683_v48 = vpop.f32.mrf.mxu3 }
  0xea   :  { %v1249_v53 = vadd.f32 %v3124_v46, %v1248_v47  ;;  %v1684_v54 = vadd.f32 %v3124_v46, %v1683_v48  ;;  %v331_v55 = vpop.f32.mrf.mxu0  ;;  %v766_v56 = vpop.f32.mrf.mxu1 }
  0xeb   :  { %v332_v8 = vadd.f32 %v3124_v46, %v331_v55  ;;  %v767_v9 = vadd.f32 %v3124_v46, %v766_v56  ;;  %v2711_v56 = vld [vmem:[%s3664_s0 + $0x80] sm:$0xff] }
  0xec   :  { %v1357_v61 = vmax.f32 %v1249_v53, 0.0  ;;  %v1792_v62 = vmax.f32 %v1684_v54, 0.0 }
  0xed   :  { %2157 = vmatmul.msk.bf16.gmra.mxu0 %vm209_vm2, %v2709_v49  ;;  %2332 = vmatmul.msk.bf16.gmra.mxu1 %vm209_vm2, %v2734_v50  ;;  %v438_v14 = vmax.f32 %v332_v8, 0.0  ;;  %v873_v15 = vmax.f32 %v767_v9, 0.0 }
  0xee   :  { %v1842_v0 = vmax.f32 %v1357_v61, %v1792_v62  ;;  %2507 = vmatmul.msk.bf16.gmra.mxu2 %vm209_vm2, %v2759_v57  ;;  %2682 = vmatmul.msk.bf16.gmra.mxu3 %vm209_vm2, %v2784_v58  ;;  %v2736_v57 = vld [vmem:[%s3664_s0 + $0x148] sm:$0xff] }
  0xef   :  { %v923_v30 = vmax.f32 %v438_v14, %v873_v15 }
  0xf0   :  { %v1892_v2 = vmax.f32 %v922_v63, %v1842_v0  ;;  %v2761_v0 = vld [vmem:[%s3664_s0 + $0x210] sm:$0xff] }
  0xf1   :  { %v1251_v3 = vpop.f32.mrf.mxu2  ;;  %v1686_v4 = vpop.f32.mrf.mxu3 }
  0xf2   :  { %v2823_v5 = vpack.c.bf16 %v1892_v2, %v1891_v1  ;;  %v333_v6 = vpop.f32.mrf.mxu0  ;;  %v768_v7 = vpop.f32.mrf.mxu1  ;;  %v1252_v10 = vadd.f32 %v3124_v46, %v1251_v3  ;;  %v1687_v11 = vadd.f32 %v3124_v46, %v1686_v4  ;;  %v2786_v1 = vld [vmem:[%s3664_s0 + $0x2d8] sm:$0xff] }
  0xf3   :  { %v334_v12 = vadd.f32 %v3124_v46, %v333_v6  ;;  %v769_v13 = vadd.f32 %v3124_v46, %v768_v7 }
  0xf4   :  { %2924 = vst [vmem:[%s3665_s3 + $0x28] sm:$0xff] %v2823_v5   ;;  %v1358_v16 = vmax.f32 %v1252_v10, 0.0  ;;  %v1793_v17 = vmax.f32 %v1687_v11, 0.0 }
  0xf5   :  { %v439_v22 = vmax.f32 %v334_v12, 0.0  ;;  %v874_v23 = vmax.f32 %v769_v13, 0.0 }
  0xf6   :  { %v1843_v31 = vmax.f32 %v1358_v16, %v1793_v17 }
  0xf7   :  { %v924_v34 = vmax.f32 %v439_v22, %v874_v23 }
  0xf8   :  { %v1893_v36 = vmax.f32 %v923_v30, %v1843_v31 }
  0xf9   :  { %v1253_v18 = vpop.f32.mrf.mxu2  ;;  %v1688_v19 = vpop.f32.mrf.mxu3 }
  0xfa   :  { %v1254_v24 = vadd.f32 %v3124_v46, %v1253_v18  ;;  %v1689_v25 = vadd.f32 %v3124_v46, %v1688_v19  ;;  %v336_v26 = vpop.f32.mrf.mxu0  ;;  %v771_v27 = vpop.f32.mrf.mxu1 }
  0xfb   :  { %v337_v43 = vadd.f32 %v3124_v46, %v336_v26  ;;  %v772_v44 = vadd.f32 %v3124_v46, %v771_v27  ;;  %v2712_v27 = vld [vmem:[%s3664_s0 + $0x88] sm:$0xff] }
  0xfc   :  { %v1359_v32 = vmax.f32 %v1254_v24, 0.0  ;;  %v1794_v33 = vmax.f32 %v1689_v25, 0.0 }
  0xfd   :  { %2158 = vmatmul.msk.bf16.gmra.mxu0 %vm209_vm2, %v2710_v20  ;;  %2333 = vmatmul.msk.bf16.gmra.mxu1 %vm209_vm2, %v2735_v21  ;;  %v440_v50 = vmax.f32 %v337_v43, 0.0  ;;  %v875_v51 = vmax.f32 %v772_v44, 0.0 }
  0xfe   :  { %v1844_v35 = vmax.f32 %v1359_v32, %v1794_v33  ;;  %2508 = vmatmul.msk.bf16.gmra.mxu2 %vm209_vm2, %v2760_v28  ;;  %2683 = vmatmul.msk.bf16.gmra.mxu3 %vm209_vm2, %v2785_v29  ;;  %v2737_v28 = vld [vmem:[%s3664_s0 + $0x150] sm:$0xff] }
  0xff   :  { %v925_v2 = vmax.f32 %v440_v50, %v875_v51 }
 0x100   :  { %v1894_v37 = vmax.f32 %v924_v34, %v1844_v35  ;;  %v2762_v35 = vld [vmem:[%s3664_s0 + $0x218] sm:$0xff] }
 0x101   :  { %v1256_v38 = vpop.f32.mrf.mxu2  ;;  %v1691_v39 = vpop.f32.mrf.mxu3 }
 0x102   :  { %v2828_v40 = vpack.c.bf16 %v1894_v37, %v1893_v36  ;;  %v338_v41 = vpop.f32.mrf.mxu0  ;;  %v773_v42 = vpop.f32.mrf.mxu1  ;;  %v1257_v45 = vadd.f32 %v3124_v46, %v1256_v38  ;;  %v1692_v47 = vadd.f32 %v3124_v46, %v1691_v39  ;;  %v2787_v36 = vld [vmem:[%s3664_s0 + $0x2e0] sm:$0xff] }
 0x103   :  { %v339_v48 = vadd.f32 %v3124_v46, %v338_v41  ;;  %v774_v49 = vadd.f32 %v3124_v46, %v773_v42 }
 0x104   :  { %2925 = vst [vmem:[%s3665_s3 + $0x30] sm:$0xff] %v2828_v40   ;;  %v1360_v52 = vmax.f32 %v1257_v45, 0.0  ;;  %v1795_v53 = vmax.f32 %v1692_v47, 0.0 }
 0x105   :  { %v441_v58 = vmax.f32 %v339_v48, 0.0  ;;  %v876_v59 = vmax.f32 %v774_v49, 0.0 }
 0x106   :  { %v1845_v3 = vmax.f32 %v1360_v52, %v1795_v53 }
 0x107   :  { %v926_v6 = vmax.f32 %v441_v58, %v876_v59 }
 0x108   :  { %v1895_v8 = vmax.f32 %v925_v2, %v1845_v3 }
 0x109   :  { %v1258_v54 = vpop.f32.mrf.mxu2  ;;  %v1693_v55 = vpop.f32.mrf.mxu3 }
 0x10a   :  { %v1259_v60 = vadd.f32 %v3124_v46, %v1258_v54  ;;  %v1694_v61 = vadd.f32 %v3124_v46, %v1693_v55  ;;  %v341_v62 = vpop.f32.mrf.mxu0  ;;  %v776_v63 = vpop.f32.mrf.mxu1 }
 0x10b   :  { %v342_v15 = vadd.f32 %v3124_v46, %v341_v62  ;;  %v777_v16 = vadd.f32 %v3124_v46, %v776_v63  ;;  %v2713_v63 = vld [vmem:[%s3664_s0 + $0x90] sm:$0xff] }
 0x10c   :  { %v1361_v4 = vmax.f32 %v1259_v60, 0.0  ;;  %v1796_v5 = vmax.f32 %v1694_v61, 0.0 }
 0x10d   :  { %2159 = vmatmul.msk.bf16.gmra.mxu0 %vm209_vm2, %v2711_v56  ;;  %2334 = vmatmul.msk.bf16.gmra.mxu1 %vm209_vm2, %v2736_v57  ;;  %v442_v21 = vmax.f32 %v342_v15, 0.0  ;;  %v877_v22 = vmax.f32 %v777_v16, 0.0 }
 0x10e   :  { %v1846_v7 = vmax.f32 %v1361_v4, %v1796_v5  ;;  %2509 = vmatmul.msk.bf16.gmra.mxu2 %vm209_vm2, %v2761_v0  ;;  %2684 = vmatmul.msk.bf16.gmra.mxu3 %vm209_vm2, %v2786_v1  ;;  %v2738_v0 = vld [vmem:[%s3664_s0 + $0x158] sm:$0xff] }
 0x10f   :  { %v927_v37 = vmax.f32 %v442_v21, %v877_v22 }
 0x110   :  { %v1896_v9 = vmax.f32 %v926_v6, %v1846_v7  ;;  %v2763_v7 = vld [vmem:[%s3664_s0 + $0x220] sm:$0xff] }
 0x111   :  { %v1261_v10 = vpop.f32.mrf.mxu2  ;;  %v1696_v11 = vpop.f32.mrf.mxu3 }
 0x112   :  { %v2833_v12 = vpack.c.bf16 %v1896_v9, %v1895_v8  ;;  %v343_v13 = vpop.f32.mrf.mxu0  ;;  %v778_v14 = vpop.f32.mrf.mxu1  ;;  %v1262_v17 = vadd.f32 %v3124_v46, %v1261_v10  ;;  %v1697_v18 = vadd.f32 %v3124_v46, %v1696_v11  ;;  %v2788_v8 = vld [vmem:[%s3664_s0 + $0x2e8] sm:$0xff] }
 0x113   :  { %v344_v19 = vadd.f32 %v3124_v46, %v343_v13  ;;  %v779_v20 = vadd.f32 %v3124_v46, %v778_v14 }
 0x114   :  { %2926 = vst [vmem:[%s3665_s3 + $0x38] sm:$0xff] %v2833_v12   ;;  %v1362_v23 = vmax.f32 %v1262_v17, 0.0  ;;  %v1797_v24 = vmax.f32 %v1697_v18, 0.0 }
 0x115   :  { %v443_v29 = vmax.f32 %v344_v19, 0.0  ;;  %v878_v30 = vmax.f32 %v779_v20, 0.0 }
 0x116   :  { %v1847_v38 = vmax.f32 %v1362_v23, %v1797_v24 }
 0x117   :  { %v928_v41 = vmax.f32 %v443_v29, %v878_v30 }
 0x118   :  { %v1897_v43 = vmax.f32 %v927_v37, %v1847_v38 }
 0x119   :  { %v1263_v25 = vpop.f32.mrf.mxu2  ;;  %v1698_v26 = vpop.f32.mrf.mxu3 }
 0x11a   :  { %v1264_v31 = vadd.f32 %v3124_v46, %v1263_v25  ;;  %v1699_v32 = vadd.f32 %v3124_v46, %v1698_v26  ;;  %v346_v33 = vpop.f32.mrf.mxu0  ;;  %v781_v34 = vpop.f32.mrf.mxu1 }
 0x11b   :  { %v347_v51 = vadd.f32 %v3124_v46, %v346_v33  ;;  %v782_v52 = vadd.f32 %v3124_v46, %v781_v34  ;;  %v2714_v34 = vld [vmem:[%s3664_s0 + $0x98] sm:$0xff] }
 0x11c   :  { %v1363_v39 = vmax.f32 %v1264_v31, 0.0  ;;  %v1798_v40 = vmax.f32 %v1699_v32, 0.0 }
 0x11d   :  { %2160 = vmatmul.msk.bf16.gmra.mxu0 %vm209_vm2, %v2712_v27  ;;  %2335 = vmatmul.msk.bf16.gmra.mxu1 %vm209_vm2, %v2737_v28  ;;  %v444_v57 = vmax.f32 %v347_v51, 0.0  ;;  %v879_v58 = vmax.f32 %v782_v52, 0.0 }
 0x11e   :  { %v1848_v42 = vmax.f32 %v1363_v39, %v1798_v40  ;;  %2510 = vmatmul.msk.bf16.gmra.mxu2 %vm209_vm2, %v2762_v35  ;;  %2685 = vmatmul.msk.bf16.gmra.mxu3 %vm209_vm2, %v2787_v36  ;;  %v2739_v35 = vld [vmem:[%s3664_s0 + $0x160] sm:$0xff] }
 0x11f   :  { %v929_v9 = vmax.f32 %v444_v57, %v879_v58 }
 0x120   :  { %v1898_v44 = vmax.f32 %v928_v41, %v1848_v42  ;;  %v2764_v42 = vld [vmem:[%s3664_s0 + $0x228] sm:$0xff] }
 0x121   :  { %v1266_v45 = vpop.f32.mrf.mxu2  ;;  %v1701_v47 = vpop.f32.mrf.mxu3 }
 0x122   :  { %v2838_v48 = vpack.c.bf16 %v1898_v44, %v1897_v43  ;;  %v348_v49 = vpop.f32.mrf.mxu0  ;;  %v783_v50 = vpop.f32.mrf.mxu1  ;;  %v1267_v53 = vadd.f32 %v3124_v46, %v1266_v45  ;;  %v1702_v54 = vadd.f32 %v3124_v46, %v1701_v47  ;;  %v2789_v43 = vld [vmem:[%s3664_s0 + $0x2f0] sm:$0xff] }
 0x123   :  { %v349_v55 = vadd.f32 %v3124_v46, %v348_v49  ;;  %v784_v56 = vadd.f32 %v3124_v46, %v783_v50 }
 0x124   :  { %2927 = vst [vmem:[%s3665_s3 + $0x40] sm:$0xff] %v2838_v48   ;;  %v1364_v59 = vmax.f32 %v1267_v53, 0.0  ;;  %v1799_v60 = vmax.f32 %v1702_v54, 0.0 }
 0x125   :  { %v445_v1 = vmax.f32 %v349_v55, 0.0  ;;  %v880_v2 = vmax.f32 %v784_v56, 0.0 }
 0x126   :  { %v1849_v10 = vmax.f32 %v1364_v59, %v1799_v60 }
 0x127   :  { %v930_v13 = vmax.f32 %v445_v1, %v880_v2 }
 0x128   :  { %v1899_v15 = vmax.f32 %v929_v9, %v1849_v10 }
 0x129   :  { %v1268_v61 = vpop.f32.mrf.mxu2  ;;  %v1703_v62 = vpop.f32.mrf.mxu3 }
 0x12a   :  { %v1269_v3 = vadd.f32 %v3124_v46, %v1268_v61  ;;  %v1704_v4 = vadd.f32 %v3124_v46, %v1703_v62  ;;  %v351_v5 = vpop.f32.mrf.mxu0  ;;  %v786_v6 = vpop.f32.mrf.mxu1 }
 0x12b   :  { %v352_v22 = vadd.f32 %v3124_v46, %v351_v5  ;;  %v787_v23 = vadd.f32 %v3124_v46, %v786_v6  ;;  %v2715_v6 = vld [vmem:[%s3664_s0 + $0xa0] sm:$0xff] }
 0x12c   :  { %v1365_v11 = vmax.f32 %v1269_v3, 0.0  ;;  %v1800_v12 = vmax.f32 %v1704_v4, 0.0 }
 0x12d   :  { %2161 = vmatmul.msk.bf16.gmra.mxu0 %vm209_vm2, %v2713_v63  ;;  %2336 = vmatmul.msk.bf16.gmra.mxu1 %vm209_vm2, %v2738_v0  ;;  %v446_v28 = vmax.f32 %v352_v22, 0.0  ;;  %v881_v29 = vmax.f32 %v787_v23, 0.0 }
 0x12e   :  { %v1850_v14 = vmax.f32 %v1365_v11, %v1800_v12  ;;  %2511 = vmatmul.msk.bf16.gmra.mxu2 %vm209_vm2, %v2763_v7  ;;  %2686 = vmatmul.msk.bf16.gmra.mxu3 %vm209_vm2, %v2788_v8  ;;  %v2740_v7 = vld [vmem:[%s3664_s0 + $0x168] sm:$0xff] }
 0x12f   :  { %v931_v44 = vmax.f32 %v446_v28, %v881_v29 }
 0x130   :  { %v1900_v16 = vmax.f32 %v930_v13, %v1850_v14  ;;  %v2765_v14 = vld [vmem:[%s3664_s0 + $0x230] sm:$0xff] }
 0x131   :  { %v1271_v17 = vpop.f32.mrf.mxu2  ;;  %v1706_v18 = vpop.f32.mrf.mxu3 }
 0x132   :  { %v2843_v19 = vpack.c.bf16 %v1900_v16, %v1899_v15  ;;  %v353_v20 = vpop.f32.mrf.mxu0  ;;  %v788_v21 = vpop.f32.mrf.mxu1  ;;  %v1272_v24 = vadd.f32 %v3124_v46, %v1271_v17  ;;  %v1707_v25 = vadd.f32 %v3124_v46, %v1706_v18  ;;  %v2790_v15 = vld [vmem:[%s3664_s0 + $0x2f8] sm:$0xff] }
 0x133   :  { %v354_v26 = vadd.f32 %v3124_v46, %v353_v20  ;;  %v789_v27 = vadd.f32 %v3124_v46, %v788_v21 }
 0x134   :  { %2928 = vst [vmem:[%s3665_s3 + $0x48] sm:$0xff] %v2843_v19   ;;  %v1366_v30 = vmax.f32 %v1272_v24, 0.0  ;;  %v1801_v31 = vmax.f32 %v1707_v25, 0.0 }
 0x135   :  { %v447_v36 = vmax.f32 %v354_v26, 0.0  ;;  %v882_v37 = vmax.f32 %v789_v27, 0.0 }
 0x136   :  { %v1851_v45 = vmax.f32 %v1366_v30, %v1801_v31 }
 0x137   :  { %v932_v49 = vmax.f32 %v447_v36, %v882_v37 }
 0x138   :  { %v1901_v51 = vmax.f32 %v931_v44, %v1851_v45 }
 0x139   :  { %v1273_v32 = vpop.f32.mrf.mxu2  ;;  %v1708_v33 = vpop.f32.mrf.mxu3 }
 0x13a   :  { %v1274_v38 = vadd.f32 %v3124_v46, %v1273_v32  ;;  %v1709_v39 = vadd.f32 %v3124_v46, %v1708_v33  ;;  %v356_v40 = vpop.f32.mrf.mxu0  ;;  %v791_v41 = vpop.f32.mrf.mxu1 }
 0x13b   :  { %v357_v58 = vadd.f32 %v3124_v46, %v356_v40  ;;  %v792_v59 = vadd.f32 %v3124_v46, %v791_v41  ;;  %v2716_v41 = vld [vmem:[%s3664_s0 + $0xa8] sm:$0xff] }
 0x13c   :  { %v1367_v47 = vmax.f32 %v1274_v38, 0.0  ;;  %v1802_v48 = vmax.f32 %v1709_v39, 0.0 }
 0x13d   :  { %2162 = vmatmul.msk.bf16.gmra.mxu0 %vm209_vm2, %v2714_v34  ;;  %2337 = vmatmul.msk.bf16.gmra.mxu1 %vm209_vm2, %v2739_v35  ;;  %v448_v0 = vmax.f32 %v357_v58, 0.0  ;;  %v883_v1 = vmax.f32 %v792_v59, 0.0 }
 0x13e   :  { %v1852_v50 = vmax.f32 %v1367_v47, %v1802_v48  ;;  %2512 = vmatmul.msk.bf16.gmra.mxu2 %vm209_vm2, %v2764_v42  ;;  %2687 = vmatmul.msk.bf16.gmra.mxu3 %vm209_vm2, %v2789_v43  ;;  %v2741_v42 = vld [vmem:[%s3664_s0 + $0x170] sm:$0xff] }
 0x13f   :  { %v933_v16 = vmax.f32 %v448_v0, %v883_v1  ;;  %v3480_v0 = vld [vmem:[%s3663_s2] ss:$0 sm:$0xff] }
 0x140   :  { %v1902_v52 = vmax.f32 %v932_v49, %v1852_v50  ;;  %v2766_v50 = vld [vmem:[%s3664_s0 + $0x238] sm:$0xff] }
 0x141   :  { %v1276_v53 = vpop.f32.mrf.mxu2  ;;  %v1711_v54 = vpop.f32.mrf.mxu3 }
 0x142   :  { %v2848_v55 = vpack.c.bf16 %v1902_v52, %v1901_v51  ;;  %v358_v56 = vpop.f32.mrf.mxu0  ;;  %v793_v57 = vpop.f32.mrf.mxu1  ;;  %v1277_v60 = vadd.f32 %v3124_v46, %v1276_v53  ;;  %v1712_v61 = vadd.f32 %v3124_v46, %v1711_v54  ;;  %v2791_v51 = vld [vmem:[%s3664_s0 + $0x300] sm:$0xff] }
 0x143   :  { %v359_v62 = vadd.f32 %v3124_v46, %v358_v56  ;;  %v794_v63 = vadd.f32 %v3124_v46, %v793_v57 }
 0x144   :  { %2929 = vst [vmem:[%s3665_s3 + $0x50] sm:$0xff] %v2848_v55   ;;  %v1368_v2 = vmax.f32 %v1277_v60, 0.0  ;;  %v1803_v3 = vmax.f32 %v1712_v61, 0.0 }
 0x145   :  { %v449_v8 = vmax.f32 %v359_v62, 0.0  ;;  %v884_v9 = vmax.f32 %v794_v63, 0.0 }
 0x146   :  { %v1853_v17 = vmax.f32 %v1368_v2, %v1803_v3 }
 0x147   :  { %v934_v20 = vmax.f32 %v449_v8, %v884_v9 }
 0x148   :  { %v1903_v22 = vmax.f32 %v933_v16, %v1853_v17 }
 0x149   :  { %v1278_v4 = vpop.f32.mrf.mxu2  ;;  %v1713_v5 = vpop.f32.mrf.mxu3 }
 0x14a   :  { %v1279_v10 = vadd.f32 %v3124_v46, %v1278_v4  ;;  %v1714_v11 = vadd.f32 %v3124_v46, %v1713_v5  ;;  %v361_v12 = vpop.f32.mrf.mxu0  ;;  %v796_v13 = vpop.f32.mrf.mxu1 }
 0x14b   :  { %v362_v29 = vadd.f32 %v3124_v46, %v361_v12  ;;  %v797_v30 = vadd.f32 %v3124_v46, %v796_v13  ;;  %v2717_v13 = vld [vmem:[%s3664_s0 + $0xb0] sm:$0xff] }
 0x14c   :  { %v1369_v18 = vmax.f32 %v1279_v10, 0.0  ;;  %v1804_v19 = vmax.f32 %v1714_v11, 0.0 }
 0x14d   :  { %2163 = vmatmul.msk.bf16.gmra.mxu0 %vm209_vm2, %v2715_v6  ;;  %2338 = vmatmul.msk.bf16.gmra.mxu1 %vm209_vm2, %v2740_v7  ;;  %v450_v35 = vmax.f32 %v362_v29, 0.0  ;;  %v885_v36 = vmax.f32 %v797_v30, 0.0 }
 0x14e   :  { %v1854_v21 = vmax.f32 %v1369_v18, %v1804_v19  ;;  %2513 = vmatmul.msk.bf16.gmra.mxu2 %vm209_vm2, %v2765_v14  ;;  %2688 = vmatmul.msk.bf16.gmra.mxu3 %vm209_vm2, %v2790_v15  ;;  %v2742_v14 = vld [vmem:[%s3664_s0 + $0x178] sm:$0xff] }
 0x14f   :  { %v935_v52 = vmax.f32 %v450_v35, %v885_v36 }
 0x150   :  { %v1904_v23 = vmax.f32 %v934_v20, %v1854_v21  ;;  %v2767_v21 = vld [vmem:[%s3664_s0 + $0x240] sm:$0xff] }
 0x151   :  { %v1281_v24 = vpop.f32.mrf.mxu2  ;;  %v1716_v25 = vpop.f32.mrf.mxu3 }
 0x152   :  { %v2853_v26 = vpack.c.bf16 %v1904_v23, %v1903_v22  ;;  %v363_v27 = vpop.f32.mrf.mxu0  ;;  %v798_v28 = vpop.f32.mrf.mxu1  ;;  %v1282_v31 = vadd.f32 %v3124_v46, %v1281_v24  ;;  %v1717_v32 = vadd.f32 %v3124_v46, %v1716_v25  ;;  %v2792_v22 = vld [vmem:[%s3664_s0 + $0x308] sm:$0xff] }
 0x153   :  { %v364_v33 = vadd.f32 %v3124_v46, %v363_v27  ;;  %v799_v34 = vadd.f32 %v3124_v46, %v798_v28 }
 0x154   :  { %2930 = vst [vmem:[%s3665_s3 + $0x58] sm:$0xff] %v2853_v26   ;;  %v1370_v37 = vmax.f32 %v1282_v31, 0.0  ;;  %v1805_v38 = vmax.f32 %v1717_v32, 0.0 }
 0x155   :  { %v451_v43 = vmax.f32 %v364_v33, 0.0  ;;  %v886_v44 = vmax.f32 %v799_v34, 0.0 }
 0x156   :  { %v1855_v53 = vmax.f32 %v1370_v37, %v1805_v38 }
 0x157   :  { %v936_v56 = vmax.f32 %v451_v43, %v886_v44 }
 0x158   :  { %v1905_v57 = vmax.f32 %v935_v52, %v1855_v53 }
 0x159   :  { %v1283_v39 = vpop.f32.mrf.mxu2  ;;  %v1718_v40 = vpop.f32.mrf.mxu3 }
 0x15a   :  { %v1284_v45 = vadd.f32 %v3124_v46, %v1283_v39  ;;  %v1719_v47 = vadd.f32 %v3124_v46, %v1718_v40  ;;  %v366_v48 = vpop.f32.mrf.mxu0  ;;  %v801_v49 = vpop.f32.mrf.mxu1 }
 0x15b   :  { %v367_v1 = vadd.f32 %v3480_v0, %v366_v48  ;;  %v802_v2 = vadd.f32 %v3480_v0, %v801_v49  ;;  %v2718_v49 = vld [vmem:[%s3664_s0 + $0xb8] sm:$0xff] }
 0x15c   :  { %v1371_v54 = vmax.f32 %v1284_v45, 0.0  ;;  %v1806_v55 = vmax.f32 %v1719_v47, 0.0 }
 0x15d   :  { %2164 = vmatmul.msk.bf16.gmra.mxu0 %vm209_vm2, %v2716_v41  ;;  %2339 = vmatmul.msk.bf16.gmra.mxu1 %vm209_vm2, %v2741_v42  ;;  %v452_v7 = vmax.f32 %v367_v1, 0.0  ;;  %v887_v8 = vmax.f32 %v802_v2, 0.0 }
 0x15e   :  { %v1856_v46 = vmax.f32 %v1371_v54, %v1806_v55  ;;  %2514 = vmatmul.msk.bf16.gmra.mxu2 %vm209_vm2, %v2766_v50  ;;  %2689 = vmatmul.msk.bf16.gmra.mxu3 %vm209_vm2, %v2791_v51  ;;  %v2743_v50 = vld [vmem:[%s3664_s0 + $0x180] sm:$0xff] }
 0x15f   :  { %v937_v23 = vmax.f32 %v452_v7, %v887_v8 }
 0x160   :  { %v1906_v58 = vmax.f32 %v936_v56, %v1856_v46  ;;  %v2768_v46 = vld [vmem:[%s3664_s0 + $0x248] sm:$0xff] }
 0x161   :  { %v1286_v59 = vpop.f32.mrf.mxu2  ;;  %v1721_v60 = vpop.f32.mrf.mxu3 }
 0x162   :  { %v2858_v61 = vpack.c.bf16 %v1906_v58, %v1905_v57  ;;  %v368_v62 = vpop.f32.mrf.mxu0  ;;  %v803_v63 = vpop.f32.mrf.mxu1  ;;  %v1287_v3 = vadd.f32 %v3480_v0, %v1286_v59  ;;  %v1722_v4 = vadd.f32 %v3480_v0, %v1721_v60  ;;  %v2793_v57 = vld [vmem:[%s3664_s0 + $0x310] sm:$0xff] }
 0x163   :  { %v369_v5 = vadd.f32 %v3480_v0, %v368_v62  ;;  %v804_v6 = vadd.f32 %v3480_v0, %v803_v63 }
 0x164   :  { %2931 = vst [vmem:[%s3665_s3 + $0x60] sm:$0xff] %v2858_v61   ;;  %v1372_v9 = vmax.f32 %v1287_v3, 0.0  ;;  %v1807_v10 = vmax.f32 %v1722_v4, 0.0 }
 0x165   :  { %v453_v15 = vmax.f32 %v369_v5, 0.0  ;;  %v888_v16 = vmax.f32 %v804_v6, 0.0 }
 0x166   :  { %v1857_v24 = vmax.f32 %v1372_v9, %v1807_v10 }
 0x167   :  { %v938_v27 = vmax.f32 %v453_v15, %v888_v16 }
 0x168   :  { %v1907_v29 = vmax.f32 %v937_v23, %v1857_v24 }
 0x169   :  { %v1288_v11 = vpop.f32.mrf.mxu2  ;;  %v1723_v12 = vpop.f32.mrf.mxu3 }
 0x16a   :  { %v1289_v17 = vadd.f32 %v3480_v0, %v1288_v11  ;;  %v1724_v18 = vadd.f32 %v3480_v0, %v1723_v12  ;;  %v371_v19 = vpop.f32.mrf.mxu0  ;;  %v806_v20 = vpop.f32.mrf.mxu1 }
 0x16b   :  { %v372_v36 = vadd.f32 %v3480_v0, %v371_v19  ;;  %v807_v37 = vadd.f32 %v3480_v0, %v806_v20  ;;  %v2719_v20 = vld [vmem:[%s3664_s0 + $0xc0] sm:$0xff] }
 0x16c   :  { %v1373_v25 = vmax.f32 %v1289_v17, 0.0  ;;  %v1808_v26 = vmax.f32 %v1724_v18, 0.0 }
 0x16d   :  { %2165 = vmatmul.msk.bf16.gmra.mxu0 %vm209_vm2, %v2717_v13  ;;  %2340 = vmatmul.msk.bf16.gmra.mxu1 %vm209_vm2, %v2742_v14  ;;  %v454_v42 = vmax.f32 %v372_v36, 0.0  ;;  %v889_v43 = vmax.f32 %v807_v37, 0.0 }
 0x16e   :  { %v1858_v28 = vmax.f32 %v1373_v25, %v1808_v26  ;;  %2515 = vmatmul.msk.bf16.gmra.mxu2 %vm209_vm2, %v2767_v21  ;;  %2690 = vmatmul.msk.bf16.gmra.mxu3 %vm209_vm2, %v2792_v22  ;;  %v2744_v21 = vld [vmem:[%s3664_s0 + $0x188] sm:$0xff] }
 0x16f   :  { %v939_v58 = vmax.f32 %v454_v42, %v889_v43 }
 0x170   :  { %v1908_v30 = vmax.f32 %v938_v27, %v1858_v28  ;;  %v2769_v28 = vld [vmem:[%s3664_s0 + $0x250] sm:$0xff] }
 0x171   :  { %v1291_v31 = vpop.f32.mrf.mxu2  ;;  %v1726_v32 = vpop.f32.mrf.mxu3 }
 0x172   :  { %v2863_v33 = vpack.c.bf16 %v1908_v30, %v1907_v29  ;;  %v373_v34 = vpop.f32.mrf.mxu0  ;;  %v808_v35 = vpop.f32.mrf.mxu1  ;;  %v1292_v38 = vadd.f32 %v3480_v0, %v1291_v31  ;;  %v1727_v39 = vadd.f32 %v3480_v0, %v1726_v32  ;;  %v2794_v29 = vld [vmem:[%s3664_s0 + $0x318] sm:$0xff] }
 0x173   :  { %v374_v40 = vadd.f32 %v3480_v0, %v373_v34  ;;  %v809_v41 = vadd.f32 %v3480_v0, %v808_v35 }
 0x174   :  { %2932 = vst [vmem:[%s3665_s3 + $0x68] sm:$0xff] %v2863_v33   ;;  %v1374_v44 = vmax.f32 %v1292_v38, 0.0  ;;  %v1809_v45 = vmax.f32 %v1727_v39, 0.0 }
 0x175   :  { %v455_v51 = vmax.f32 %v374_v40, 0.0  ;;  %v890_v52 = vmax.f32 %v809_v41, 0.0 }
 0x176   :  { %v1859_v59 = vmax.f32 %v1374_v44, %v1809_v45 }
 0x177   :  { %v940_v62 = vmax.f32 %v455_v51, %v890_v52 }
 0x178   :  { %v1909_v1 = vmax.f32 %v939_v58, %v1859_v59 }
 0x179   :  { %v1293_v47 = vpop.f32.mrf.mxu2  ;;  %v1728_v48 = vpop.f32.mrf.mxu3 }
 0x17a   :  { %v1294_v53 = vadd.f32 %v3480_v0, %v1293_v47  ;;  %v1729_v54 = vadd.f32 %v3480_v0, %v1728_v48  ;;  %v376_v55 = vpop.f32.mrf.mxu0  ;;  %v811_v56 = vpop.f32.mrf.mxu1 }
 0x17b   :  { %v377_v8 = vadd.f32 %v3480_v0, %v376_v55  ;;  %v812_v9 = vadd.f32 %v3480_v0, %v811_v56 }
 0x17c   :  { %v1375_v60 = vmax.f32 %v1294_v53, 0.0  ;;  %v1810_v61 = vmax.f32 %v1729_v54, 0.0 }
 0x17d   :  { %2166 = vmatmul.msk.bf16.gmra.mxu0 %vm209_vm2, %v2718_v49  ;;  %2341 = vmatmul.msk.bf16.gmra.mxu1 %vm209_vm2, %v2743_v50  ;;  %v456_v14 = vmax.f32 %v377_v8, 0.0  ;;  %v891_v15 = vmax.f32 %v812_v9, 0.0 }
 0x17e   :  { %v1860_v63 = vmax.f32 %v1375_v60, %v1810_v61  ;;  %2516 = vmatmul.msk.bf16.gmra.mxu2 %vm209_vm2, %v2768_v46  ;;  %2691 = vmatmul.msk.bf16.gmra.mxu3 %vm209_vm2, %v2793_v57 }
 0x17f   :  { %v941_v30 = vmax.f32 %v456_v14, %v891_v15 }
 0x180   :  { %v1910_v2 = vmax.f32 %v940_v62, %v1860_v63 }
 0x181   :  { %v1296_v3 = vpop.f32.mrf.mxu2  ;;  %v1731_v4 = vpop.f32.mrf.mxu3 }
 0x182   :  { %v2868_v5 = vpack.c.bf16 %v1910_v2, %v1909_v1  ;;  %v378_v6 = vpop.f32.mrf.mxu0  ;;  %v813_v7 = vpop.f32.mrf.mxu1  ;;  %v1297_v10 = vadd.f32 %v3480_v0, %v1296_v3  ;;  %v1732_v11 = vadd.f32 %v3480_v0, %v1731_v4 }
 0x183   :  { %v379_v12 = vadd.f32 %v3480_v0, %v378_v6  ;;  %v814_v13 = vadd.f32 %v3480_v0, %v813_v7 }
 0x184   :  { %2933 = vst [vmem:[%s3665_s3 + $0x70] sm:$0xff] %v2868_v5   ;;  %v1376_v16 = vmax.f32 %v1297_v10, 0.0  ;;  %v1811_v17 = vmax.f32 %v1732_v11, 0.0 }
 0x185   :  { %v457_v22 = vmax.f32 %v379_v12, 0.0  ;;  %v892_v23 = vmax.f32 %v814_v13, 0.0 }
 0x186   :  { %v1861_v31 = vmax.f32 %v1376_v16, %v1811_v17 }
 0x187   :  { %v942_v34 = vmax.f32 %v457_v22, %v892_v23 }
 0x188   :  { %v1911_v36 = vmax.f32 %v941_v30, %v1861_v31 }
 0x189   :  { %v1298_v18 = vpop.f32.mrf.mxu2  ;;  %v1733_v19 = vpop.f32.mrf.mxu3 }
 0x18a   :  { %v1299_v24 = vadd.f32 %v3480_v0, %v1298_v18  ;;  %v1734_v25 = vadd.f32 %v3480_v0, %v1733_v19  ;;  %v381_v26 = vpop.f32.mrf.mxu0  ;;  %v816_v27 = vpop.f32.mrf.mxu1 }
 0x18b   :  { %v382_v43 = vadd.f32 %v3480_v0, %v381_v26  ;;  %v817_v44 = vadd.f32 %v3480_v0, %v816_v27 }
 0x18c   :  { %v1377_v32 = vmax.f32 %v1299_v24, 0.0  ;;  %v1812_v33 = vmax.f32 %v1734_v25, 0.0 }
 0x18d   :  { %2167 = vmatmul.msk.bf16.gmra.mxu0 %vm209_vm2, %v2719_v20  ;;  %2342 = vmatmul.msk.bf16.gmra.mxu1 %vm209_vm2, %v2744_v21  ;;  %v458_v50 = vmax.f32 %v382_v43, 0.0  ;;  %v893_v51 = vmax.f32 %v817_v44, 0.0 }
 0x18e   :  { %v1862_v35 = vmax.f32 %v1377_v32, %v1812_v33  ;;  %2517 = vmatmul.msk.bf16.gmra.mxu2 %vm209_vm2, %v2769_v28  ;;  %2692 = vmatmul.msk.bf16.gmra.mxu3 %vm209_vm2, %v2794_v29 }
 0x18f   :  { %v943_v61 = vmax.f32 %v458_v50, %v893_v51 }
 0x190   :  { %v1912_v37 = vmax.f32 %v942_v34, %v1862_v35 }
 0x191   :  { %v1301_v38 = vpop.f32.mrf.mxu2  ;;  %v1736_v39 = vpop.f32.mrf.mxu3 }
 0x192   :  { %v2873_v40 = vpack.c.bf16 %v1912_v37, %v1911_v36  ;;  %v383_v41 = vpop.f32.mrf.mxu0  ;;  %v818_v42 = vpop.f32.mrf.mxu1  ;;  %v1302_v45 = vadd.f32 %v3480_v0, %v1301_v38  ;;  %v1737_v47 = vadd.f32 %v3480_v0, %v1736_v39 }
 0x193   :  { %v384_v48 = vadd.f32 %v3480_v0, %v383_v41  ;;  %v819_v49 = vadd.f32 %v3480_v0, %v818_v42 }
 0x194   :  { %2934 = vst [vmem:[%s3665_s3 + $0x78] sm:$0xff] %v2873_v40   ;;  %v1378_v52 = vmax.f32 %v1302_v45, 0.0  ;;  %v1813_v53 = vmax.f32 %v1737_v47, 0.0 }
 0x195   :  { %v459_v56 = vmax.f32 %v384_v48, 0.0  ;;  %v894_v46 = vmax.f32 %v819_v49, 0.0 }
 0x196   :  { %v1863_v62 = vmax.f32 %v1378_v52, %v1813_v53 }
 0x197   :  { %v944_v2 = vmax.f32 %v459_v56, %v894_v46 }
 0x198   :  { %v1913_v4 = vmax.f32 %v943_v61, %v1863_v62 }
 0x199   :  { %v1303_v54 = vpop.f32.mrf.mxu2  ;;  %v1738_v55 = vpop.f32.mrf.mxu3 }
 0x19a   :  { %v1304_v57 = vadd.f32 %v3480_v0, %v1303_v54  ;;  %v1739_v58 = vadd.f32 %v3480_v0, %v1738_v55  ;;  %v386_v59 = vpop.f32.mrf.mxu0  ;;  %v821_v60 = vpop.f32.mrf.mxu1 }
 0x19b   :  { %v387_v11 = vadd.f32 %v3480_v0, %v386_v59  ;;  %v822_v12 = vadd.f32 %v3480_v0, %v821_v60 }
 0x19c   :  { %v1379_v63 = vmax.f32 %v1304_v57, 0.0  ;;  %v1814_v1 = vmax.f32 %v1739_v58, 0.0 }
 0x19d   :  { %v460_v17 = vmax.f32 %v387_v11, 0.0  ;;  %v895_v18 = vmax.f32 %v822_v12, 0.0 }
 0x19e   :  { %v1864_v3 = vmax.f32 %v1379_v63, %v1814_v1 }
 0x19f   :  { %v945_v29 = vmax.f32 %v460_v17, %v895_v18 }
 0x1a0   :  { %v1914_v5 = vmax.f32 %v944_v2, %v1864_v3 }
 0x1a1   :  { %v1306_v6 = vpop.f32.mrf.mxu2  ;;  %v1741_v7 = vpop.f32.mrf.mxu3 }
 0x1a2   :  { %v2878_v8 = vpack.c.bf16 %v1914_v5, %v1913_v4  ;;  %v388_v9 = vpop.f32.mrf.mxu0  ;;  %v823_v10 = vpop.f32.mrf.mxu1  ;;  %v1307_v13 = vadd.f32 %v3480_v0, %v1306_v6  ;;  %v1742_v14 = vadd.f32 %v3480_v0, %v1741_v7 }
 0x1a3   :  { %v389_v15 = vadd.f32 %v3480_v0, %v388_v9  ;;  %v824_v16 = vadd.f32 %v3480_v0, %v823_v10 }
 0x1a4   :  { %2935 = vst [vmem:[%s3665_s3 + $0x80] sm:$0xff] %v2878_v8   ;;  %v1380_v19 = vmax.f32 %v1307_v13, 0.0  ;;  %v1815_v20 = vmax.f32 %v1742_v14, 0.0 }
 0x1a5   :  { %v461_v23 = vmax.f32 %v389_v15, 0.0  ;;  %v896_v24 = vmax.f32 %v824_v16, 0.0 }
 0x1a6   :  { %v1865_v30 = vmax.f32 %v1380_v19, %v1815_v20 }
 0x1a7   :  { %v946_v33 = vmax.f32 %v461_v23, %v896_v24 }
 0x1a8   :  { %v1915_v35 = vmax.f32 %v945_v29, %v1865_v30 }
 0x1a9   :  { %v1308_v21 = vpop.f32.mrf.mxu2  ;;  %v1743_v22 = vpop.f32.mrf.mxu3 }
 0x1aa   :  { %v1309_v25 = vadd.f32 %v3480_v0, %v1308_v21  ;;  %v1744_v26 = vadd.f32 %v3480_v0, %v1743_v22  ;;  %v391_v27 = vpop.f32.mrf.mxu0  ;;  %v826_v28 = vpop.f32.mrf.mxu1 }
 0x1ab   :  { %v392_v42 = vadd.f32 %v3480_v0, %v391_v27  ;;  %v827_v43 = vadd.f32 %v3480_v0, %v826_v28 }
 0x1ac   :  { %v1381_v31 = vmax.f32 %v1309_v25, 0.0  ;;  %v1816_v32 = vmax.f32 %v1744_v26, 0.0 }
 0x1ad   :  { %v462_v49 = vmax.f32 %v392_v42, 0.0  ;;  %v897_v50 = vmax.f32 %v827_v43, 0.0 }
 0x1ae   :  { %v1866_v34 = vmax.f32 %v1381_v31, %v1816_v32 }
 0x1af   :  { %v947_v60 = vmax.f32 %v462_v49, %v897_v50 }
 0x1b0   :  { %v1916_v36 = vmax.f32 %v946_v33, %v1866_v34 }
 0x1b1   :  { %v1311_v37 = vpop.f32.mrf.mxu2  ;;  %v1746_v38 = vpop.f32.mrf.mxu3 }
 0x1b2   :  { %v2883_v39 = vpack.c.bf16 %v1916_v36, %v1915_v35  ;;  %v393_v40 = vpop.f32.mrf.mxu0  ;;  %v828_v41 = vpop.f32.mrf.mxu1  ;;  %v1312_v44 = vadd.f32 %v3480_v0, %v1311_v37  ;;  %v1747_v45 = vadd.f32 %v3480_v0, %v1746_v38 }
 0x1b3   :  { %v394_v47 = vadd.f32 %v3480_v0, %v393_v40  ;;  %v829_v48 = vadd.f32 %v3480_v0, %v828_v41 }
 0x1b4   :  { %2936 = vst [vmem:[%s3665_s3 + $0x88] sm:$0xff] %v2883_v39   ;;  %v1382_v51 = vmax.f32 %v1312_v44, 0.0  ;;  %v1817_v52 = vmax.f32 %v1747_v45, 0.0 }
 0x1b5   :  { %v463_v55 = vmax.f32 %v394_v47, 0.0  ;;  %v898_v56 = vmax.f32 %v829_v48, 0.0 }
 0x1b6   :  { %v1867_v61 = vmax.f32 %v1382_v51, %v1817_v52 }
 0x1b7   :  { %v948_v1 = vmax.f32 %v463_v55, %v898_v56 }
 0x1b8   :  { %v1917_v3 = vmax.f32 %v947_v60, %v1867_v61 }
 0x1b9   :  { %v1313_v53 = vpop.f32.mrf.mxu2  ;;  %v1748_v54 = vpop.f32.mrf.mxu3 }
 0x1ba   :  { %v1314_v46 = vadd.f32 %v3480_v0, %v1313_v53  ;;  %v1749_v57 = vadd.f32 %v3480_v0, %v1748_v54  ;;  %v396_v58 = vpop.f32.mrf.mxu0  ;;  %v831_v59 = vpop.f32.mrf.mxu1 }
 0x1bb   :  { %v397_v10 = vadd.f32 %v3480_v0, %v396_v58  ;;  %v832_v11 = vadd.f32 %v3480_v0, %v831_v59 }
 0x1bc   :  { %v1383_v62 = vmax.f32 %v1314_v46, 0.0  ;;  %v1818_v63 = vmax.f32 %v1749_v57, 0.0 }
 0x1bd   :  { %v464_v16 = vmax.f32 %v397_v10, 0.0  ;;  %v899_v17 = vmax.f32 %v832_v11, 0.0 }
 0x1be   :  { %v1868_v2 = vmax.f32 %v1383_v62, %v1818_v63 }
 0x1bf   :  { %v949_v28 = vmax.f32 %v464_v16, %v899_v17 }
 0x1c0   :  { %v1918_v4 = vmax.f32 %v948_v1, %v1868_v2 }
 0x1c1   :  { %v1316_v5 = vpop.f32.mrf.mxu2  ;;  %v1751_v6 = vpop.f32.mrf.mxu3 }
 0x1c2   :  { %v2888_v7 = vpack.c.bf16 %v1918_v4, %v1917_v3  ;;  %v398_v8 = vpop.f32.mrf.mxu0  ;;  %v833_v9 = vpop.f32.mrf.mxu1  ;;  %v1317_v12 = vadd.f32 %v3480_v0, %v1316_v5  ;;  %v1752_v13 = vadd.f32 %v3480_v0, %v1751_v6 }
 0x1c3   :  { %v399_v14 = vadd.f32 %v3480_v0, %v398_v8  ;;  %v834_v15 = vadd.f32 %v3480_v0, %v833_v9 }
 0x1c4   :  { %2937 = vst [vmem:[%s3665_s3 + $0x90] sm:$0xff] %v2888_v7   ;;  %v1384_v18 = vmax.f32 %v1317_v12, 0.0  ;;  %v1819_v19 = vmax.f32 %v1752_v13, 0.0 }
 0x1c5   :  { %v465_v22 = vmax.f32 %v399_v14, 0.0  ;;  %v900_v23 = vmax.f32 %v834_v15, 0.0 }
 0x1c6   :  { %v1869_v29 = vmax.f32 %v1384_v18, %v1819_v19 }
 0x1c7   :  { %v950_v32 = vmax.f32 %v465_v22, %v900_v23 }
 0x1c8   :  { %v1919_v34 = vmax.f32 %v949_v28, %v1869_v29 }
 0x1c9   :  { %v1318_v20 = vpop.f32.mrf.mxu2  ;;  %v1753_v21 = vpop.f32.mrf.mxu3 }
 0x1ca   :  { %v1319_v24 = vadd.f32 %v3480_v0, %v1318_v20  ;;  %v1754_v25 = vadd.f32 %v3480_v0, %v1753_v21  ;;  %v401_v26 = vpop.f32.mrf.mxu0  ;;  %v836_v27 = vpop.f32.mrf.mxu1 }
 0x1cb   :  { %v402_v41 = vadd.f32 %v3480_v0, %v401_v26  ;;  %v837_v42 = vadd.f32 %v3480_v0, %v836_v27 }
 0x1cc   :  { %v1385_v30 = vmax.f32 %v1319_v24, 0.0  ;;  %v1820_v31 = vmax.f32 %v1754_v25, 0.0 }
 0x1cd   :  { %v466_v48 = vmax.f32 %v402_v41, 0.0  ;;  %v901_v49 = vmax.f32 %v837_v42, 0.0 }
 0x1ce   :  { %v1870_v33 = vmax.f32 %v1385_v30, %v1820_v31 }
 0x1cf   :  { %v951_v59 = vmax.f32 %v466_v48, %v901_v49 }
 0x1d0   :  { %v1920_v35 = vmax.f32 %v950_v32, %v1870_v33 }
 0x1d1   :  { %v1321_v36 = vpop.f32.mrf.mxu2  ;;  %v1756_v37 = vpop.f32.mrf.mxu3 }
 0x1d2   :  { %v2893_v38 = vpack.c.bf16 %v1920_v35, %v1919_v34  ;;  %v403_v39 = vpop.f32.mrf.mxu0  ;;  %v838_v40 = vpop.f32.mrf.mxu1  ;;  %v1322_v43 = vadd.f32 %v3480_v0, %v1321_v36  ;;  %v1757_v44 = vadd.f32 %v3480_v0, %v1756_v37 }
 0x1d3   :  { %v404_v45 = vadd.f32 %v3480_v0, %v403_v39  ;;  %v839_v47 = vadd.f32 %v3480_v0, %v838_v40 }
 0x1d4   :  { %2938 = vst [vmem:[%s3665_s3 + $0x98] sm:$0xff] %v2893_v38   ;;  %v1386_v50 = vmax.f32 %v1322_v43, 0.0  ;;  %v1821_v51 = vmax.f32 %v1757_v44, 0.0 }
 0x1d5   :  { %v467_v54 = vmax.f32 %v404_v45, 0.0  ;;  %v902_v55 = vmax.f32 %v839_v47, 0.0 }
 0x1d6   :  { %v1871_v60 = vmax.f32 %v1386_v50, %v1821_v51 }
 0x1d7   :  { %v952_v63 = vmax.f32 %v467_v54, %v902_v55 }
 0x1d8   :  { %v1921_v2 = vmax.f32 %v951_v59, %v1871_v60 }
 0x1d9   :  { %v1323_v52 = vpop.f32.mrf.mxu2  ;;  %v1758_v53 = vpop.f32.mrf.mxu3 }
 0x1da   :  { %v1324_v56 = vadd.f32 %v3480_v0, %v1323_v52  ;;  %v1759_v46 = vadd.f32 %v3480_v0, %v1758_v53  ;;  %v406_v57 = vpop.f32.mrf.mxu0  ;;  %v841_v58 = vpop.f32.mrf.mxu1 }
 0x1db   :  { %v407_v9 = vadd.f32 %v3480_v0, %v406_v57  ;;  %v842_v10 = vadd.f32 %v3480_v0, %v841_v58 }
 0x1dc   :  { %v1387_v61 = vmax.f32 %v1324_v56, 0.0  ;;  %v1822_v62 = vmax.f32 %v1759_v46, 0.0 }
 0x1dd   :  { %v468_v15 = vmax.f32 %v407_v9, 0.0  ;;  %v903_v16 = vmax.f32 %v842_v10, 0.0 }
 0x1de   :  { %v1872_v1 = vmax.f32 %v1387_v61, %v1822_v62 }
 0x1df   :  { %v953_v27 = vmax.f32 %v468_v15, %v903_v16 }
 0x1e0   :  { %v1922_v3 = vmax.f32 %v952_v63, %v1872_v1 }
 0x1e1   :  { %v1326_v4 = vpop.f32.mrf.mxu2  ;;  %v1761_v5 = vpop.f32.mrf.mxu3 }
 0x1e2   :  { %v2898_v6 = vpack.c.bf16 %v1922_v3, %v1921_v2  ;;  %v408_v7 = vpop.f32.mrf.mxu0  ;;  %v843_v8 = vpop.f32.mrf.mxu1  ;;  %v1327_v11 = vadd.f32 %v3480_v0, %v1326_v4  ;;  %v1762_v12 = vadd.f32 %v3480_v0, %v1761_v5 }
 0x1e3   :  { %v409_v13 = vadd.f32 %v3480_v0, %v408_v7  ;;  %v844_v14 = vadd.f32 %v3480_v0, %v843_v8 }
 0x1e4   :  { %2939 = vst [vmem:[%s3665_s3 + $0xa0] sm:$0xff] %v2898_v6   ;;  %v1388_v17 = vmax.f32 %v1327_v11, 0.0  ;;  %v1823_v18 = vmax.f32 %v1762_v12, 0.0 }
 0x1e5   :  { %v469_v21 = vmax.f32 %v409_v13, 0.0  ;;  %v904_v22 = vmax.f32 %v844_v14, 0.0 }
 0x1e6   :  { %v1873_v28 = vmax.f32 %v1388_v17, %v1823_v18 }
 0x1e7   :  { %v954_v31 = vmax.f32 %v469_v21, %v904_v22 }
 0x1e8   :  { %v1923_v33 = vmax.f32 %v953_v27, %v1873_v28 }
 0x1e9   :  { %v1328_v19 = vpop.f32.mrf.mxu2  ;;  %v1763_v20 = vpop.f32.mrf.mxu3 }
 0x1ea   :  { %v1329_v23 = vadd.f32 %v3480_v0, %v1328_v19  ;;  %v1764_v24 = vadd.f32 %v3480_v0, %v1763_v20  ;;  %v411_v25 = vpop.f32.mrf.mxu0  ;;  %v846_v26 = vpop.f32.mrf.mxu1 }
 0x1eb   :  { %v412_v40 = vadd.f32 %v3480_v0, %v411_v25  ;;  %v847_v41 = vadd.f32 %v3480_v0, %v846_v26 }
 0x1ec   :  { %v1389_v29 = vmax.f32 %v1329_v23, 0.0  ;;  %v1824_v30 = vmax.f32 %v1764_v24, 0.0 }
 0x1ed   :  { %v470_v47 = vmax.f32 %v412_v40, 0.0  ;;  %v905_v48 = vmax.f32 %v847_v41, 0.0 }
 0x1ee   :  { %v1874_v32 = vmax.f32 %v1389_v29, %v1824_v30 }
 0x1ef   :  { %v955_v58 = vmax.f32 %v470_v47, %v905_v48 }
 0x1f0   :  { %v1924_v34 = vmax.f32 %v954_v31, %v1874_v32 }
 0x1f1   :  { %v1331_v35 = vpop.f32.mrf.mxu2  ;;  %v1766_v36 = vpop.f32.mrf.mxu3 }
 0x1f2   :  { %v2903_v37 = vpack.c.bf16 %v1924_v34, %v1923_v33  ;;  %v413_v38 = vpop.f32.mrf.mxu0  ;;  %v848_v39 = vpop.f32.mrf.mxu1  ;;  %v1332_v42 = vadd.f32 %v3480_v0, %v1331_v35  ;;  %v1767_v43 = vadd.f32 %v3480_v0, %v1766_v36 }
 0x1f3   :  { %v414_v44 = vadd.f32 %v3480_v0, %v413_v38  ;;  %v849_v45 = vadd.f32 %v3480_v0, %v848_v39 }
 0x1f4   :  { %2940 = vst [vmem:[%s3665_s3 + $0xa8] sm:$0xff] %v2903_v37   ;;  %v1390_v49 = vmax.f32 %v1332_v42, 0.0  ;;  %v1825_v50 = vmax.f32 %v1767_v43, 0.0 }
 0x1f5   :  { %v471_v53 = vmax.f32 %v414_v44, 0.0  ;;  %v906_v54 = vmax.f32 %v849_v45, 0.0 }
 0x1f6   :  { %v1875_v59 = vmax.f32 %v1390_v49, %v1825_v50 }
 0x1f7   :  { %v956_v62 = vmax.f32 %v471_v53, %v906_v54 }
 0x1f8   :  { %v1925_v1 = vmax.f32 %v955_v58, %v1875_v59 }
 0x1f9   :  { %v1333_v51 = vpop.f32.mrf.mxu2  ;;  %v1768_v52 = vpop.f32.mrf.mxu3 }
 0x1fa   :  { %v1334_v55 = vadd.f32 %v3480_v0, %v1333_v51  ;;  %v1769_v56 = vadd.f32 %v3480_v0, %v1768_v52  ;;  %v416_v46 = vpop.f32.mrf.mxu0  ;;  %v851_v57 = vpop.f32.mrf.mxu1 }
 0x1fb   :  { %v417_v8 = vadd.f32 %v3480_v0, %v416_v46  ;;  %v852_v9 = vadd.f32 %v3480_v0, %v851_v57 }
 0x1fc   :  { %v1391_v60 = vmax.f32 %v1334_v55, 0.0  ;;  %v1826_v61 = vmax.f32 %v1769_v56, 0.0 }
 0x1fd   :  { %v472_v14 = vmax.f32 %v417_v8, 0.0  ;;  %v907_v15 = vmax.f32 %v852_v9, 0.0 }
 0x1fe   :  { %v1876_v63 = vmax.f32 %v1391_v60, %v1826_v61 }
 0x1ff   :  { %v957_v26 = vmax.f32 %v472_v14, %v907_v15 }
 0x200   :  { %v1926_v2 = vmax.f32 %v956_v62, %v1876_v63 }
 0x201   :  { %v1336_v3 = vpop.f32.mrf.mxu2  ;;  %v1771_v4 = vpop.f32.mrf.mxu3 }
 0x202   :  { %v2908_v5 = vpack.c.bf16 %v1926_v2, %v1925_v1  ;;  %v418_v6 = vpop.f32.mrf.mxu0  ;;  %v853_v7 = vpop.f32.mrf.mxu1  ;;  %v1337_v10 = vadd.f32 %v3480_v0, %v1336_v3  ;;  %v1772_v11 = vadd.f32 %v3480_v0, %v1771_v4 }
 0x203   :  { %v419_v12 = vadd.f32 %v3480_v0, %v418_v6  ;;  %v854_v13 = vadd.f32 %v3480_v0, %v853_v7 }
 0x204   :  { %2941 = vst [vmem:[%s3665_s3 + $0xb0] sm:$0xff] %v2908_v5   ;;  %v1392_v16 = vmax.f32 %v1337_v10, 0.0  ;;  %v1827_v17 = vmax.f32 %v1772_v11, 0.0 }
 0x205   :  { %v473_v20 = vmax.f32 %v419_v12, 0.0  ;;  %v908_v21 = vmax.f32 %v854_v13, 0.0 }
 0x206   :  { %v1877_v27 = vmax.f32 %v1392_v16, %v1827_v17 }
 0x207   :  { %v958_v30 = vmax.f32 %v473_v20, %v908_v21 }
 0x208   :  { %v1927_v32 = vmax.f32 %v957_v26, %v1877_v27 }
 0x209   :  { %v1338_v18 = vpop.f32.mrf.mxu2  ;;  %v1773_v19 = vpop.f32.mrf.mxu3 }
 0x20a   :  { %v1339_v22 = vadd.f32 %v3480_v0, %v1338_v18  ;;  %v1774_v23 = vadd.f32 %v3480_v0, %v1773_v19  ;;  %v421_v24 = vpop.f32.mrf.mxu0  ;;  %v856_v25 = vpop.f32.mrf.mxu1 }
 0x20b   :  { %v422_v39 = vadd.f32 %v3480_v0, %v421_v24  ;;  %v857_v40 = vadd.f32 %v3480_v0, %v856_v25 }
 0x20c   :  { %v1393_v28 = vmax.f32 %v1339_v22, 0.0  ;;  %v1828_v29 = vmax.f32 %v1774_v23, 0.0 }
 0x20d   :  { %v474_v45 = vmax.f32 %v422_v39, 0.0  ;;  %v909_v47 = vmax.f32 %v857_v40, 0.0 }
 0x20e   :  { %v1878_v31 = vmax.f32 %v1393_v28, %v1828_v29 }
 0x20f   :  { %v959_v56 = vmax.f32 %v474_v45, %v909_v47 }
 0x210   :  { %v1928_v33 = vmax.f32 %v958_v30, %v1878_v31 }
 0x211   :  { %v1341_v34 = vpop.f32.mrf.mxu2  ;;  %v1776_v35 = vpop.f32.mrf.mxu3 }
 0x212   :  { %v2913_v36 = vpack.c.bf16 %v1928_v33, %v1927_v32  ;;  %v423_v37 = vpop.f32.mrf.mxu0  ;;  %v858_v38 = vpop.f32.mrf.mxu1  ;;  %v1342_v41 = vadd.f32 %v3480_v0, %v1341_v34  ;;  %v1777_v42 = vadd.f32 %v3480_v0, %v1776_v35 }
 0x213   :  { %v424_v43 = vadd.f32 %v3480_v0, %v423_v37  ;;  %v859_v44 = vadd.f32 %v3480_v0, %v858_v38 }
 0x214   :  { %2942 = vst [vmem:[%s3665_s3 + $0xb8] sm:$0xff] %v2913_v36   ;;  %v1394_v48 = vmax.f32 %v1342_v41, 0.0  ;;  %v1829_v49 = vmax.f32 %v1777_v42, 0.0 }
 0x215   :  { %v475_v52 = vmax.f32 %v424_v43, 0.0  ;;  %v910_v53 = vmax.f32 %v859_v44, 0.0 }
 0x216   :  { %v1879_v46 = vmax.f32 %v1394_v48, %v1829_v49 }
 0x217   :  { %v960_v59 = vmax.f32 %v475_v52, %v910_v53 }
 0x218   :  { %v1929_v61 = vmax.f32 %v959_v56, %v1879_v46 }
 0x219   :  { %v1343_v50 = vpop.f32.mrf.mxu2  ;;  %v1778_v51 = vpop.f32.mrf.mxu3 }
 0x21a   :  { %v1344_v54 = vadd.f32 %v3480_v0, %v1343_v50  ;;  %v1779_v55 = vadd.f32 %v3480_v0, %v1778_v51 }
 0x21c   :  { %v1395_v57 = vmax.f32 %v1344_v54, 0.0  ;;  %v1830_v58 = vmax.f32 %v1779_v55, 0.0 }
 0x21e   :  { %v1880_v60 = vmax.f32 %v1395_v57, %v1830_v58 }
 0x220   :  { %v1930_v62 = vmax.f32 %v960_v59, %v1880_v60 }
 0x222   :  { %v2918_v63 = vpack.c.bf16 %v1930_v62, %v1929_v61 }
 0x224   :  { %2943 = vst [vmem:[%s3665_s3 + $0xc0] sm:$0xff] %v2918_v63  }

// kernel: lenet5_forward.4
= control target key start
LH: loop header
LB: loop body
LE: loop exit
PB: predicated region body
PF: predicated region fallthrough
CT: control target
= control target key end

     0   :  { %vm152_vm0 = vcmask 1042432   ;;  %vm139_vm1 = vcmask 179200   ;;  %s1247_s1 = inlined_call_operand.vmem [shape: bf16[150,128], index: 1, kind: input, shape index: {}]   ;;  %s1248_s0 = inlined_call_operand.vmem [shape: bf16[4,64,150], index: 0, kind: input, shape index: {}]   ;;  %s1249_s2 = inlined_call_operand.vmem [shape: f32[1,128], index: 2, kind: input, shape index: {}]   ;;  %s1250_s3 = inlined_call_operand.vmem [shape: bf16[64,128], index: 3, kind: output, shape index: {}]  }
   0x1   :  { %v927_v0 = vld [vmem:[%s1247_s1 + $0x38] sm:$0xff]  ;;  %v33_v1 = vld [vmem:[%s1247_s1 + $0x48] sm:$0x7]  ;;  %v937_v2 = vld [vmem:[%s1247_s1 + $0x30] sm:$0xff] }
   0x2   :  { %156 = vmatpush.bf16.msra.mxu0 %v927_v0  ;;  %279 = vmatpush.bf16.msra.mxu2 %v927_v0  ;;  %v119_v3 = vunpack.c.l.b16 %v33_v1  ;;  %v844_v5 = vld [vmem:[%s1247_s1 + $0x28] sm:$0xff]  ;;  %v847_v7 = vld [vmem:[%s1247_s1 + $0x40] sm:$0xff]  ;;  %v842_v15 = vld [vmem:[%s1247_s1 + $0x18] sm:$0xff] }
   0x3   :  { %v856_v8 = vld [vmem:[%s1248_s0 + $0x44] sm:$0xf]  ;;  %v719_v9 = vld [vmem:[%s1248_s0 + $0x48] sm:$0xf0]  ;;  %v841_v16 = vld [vmem:[%s1247_s1 + $0x10] sm:$0xff] }
   0x4   :  { %v129_v4 = vpack.c.b16 %v119_v3, %v119_v3  ;;  %v848_v10 = vld [vmem:[%s1248_s0 + $0x4] sm:$0xf]  ;;  %v639_v11 = vld [vmem:[%s1248_s0 + $0x8] sm:$0xf0]  ;;  %v722_v13 = vor.u32 %v856_v8, %v719_v9  ;;  %v637_v19 = vld [vmem:[%s1248_s0] sm:$0xf] }
   0x5   :  { %v843_v12 = vld [vmem:[%s1247_s1 + $0x20] sm:$0xff]  ;;  %v642_v14 = vor.u32 %v848_v10, %v639_v11  ;;  %v840_v17 = vld [vmem:[%s1247_s1 + $0x8] sm:$0xff]  ;;  %v858_v20 = vld [vmem:[%s1248_s0 + $0x54] sm:$0xf] }
   0x6   :  { %157 = vmatpush.bf16.msra.mxu0 %v937_v2  ;;  %280 = vmatpush.bf16.msra.mxu2 %v937_v2  ;;  %v154_v6 = vsel %vm152_vm0, %v129_v4, 0  ;;  %v839_v18 = vld [vmem:[%s1247_s1] sm:$0xff]  ;;  %v727_v21 = vld [vmem:[%s1248_s0 + $0x58] sm:$0xf0]  ;;  %v850_v22 = vld [vmem:[%s1248_s0 + $0x14] sm:$0xf] }
   0x7   :  { %314 = vmatpush.bf16.msra.mxu3 %v154_v6  ;;  %191 = vmatpush.bf16.msra.mxu1 %v154_v6  ;;  %v647_v23 = vld [vmem:[%s1248_s0 + $0x18] sm:$0xf0]  ;;  %v849_v24 = vld [vmem:[%s1248_s0 + $0x4] sm:$0xf0]  ;;  %v717_v25 = vld [vmem:[%s1248_s0 + $0x40] sm:$0xf]  ;;  %v730_v27 = vor.u32 %v858_v20, %v727_v21 }
   0x8   :  { %v857_v26 = vld [vmem:[%s1248_s0 + $0x44] sm:$0xf0]  ;;  %v650_v28 = vor.u32 %v850_v22, %v647_v23  ;;  %v638_v29 = vor.u32 %v849_v24, %v637_v19  ;;  %v645_v31 = vld [vmem:[%s1248_s0 + $0x10] sm:$0xf]  ;;  %v860_v32 = vld [vmem:[%s1248_s0 + $0x64] sm:$0xf] }
   0x9   :  { %v718_v30 = vor.u32 %v857_v26, %v717_v25  ;;  %v735_v33 = vld [vmem:[%s1248_s0 + $0x68] sm:$0xf0]  ;;  %v852_v34 = vld [vmem:[%s1248_s0 + $0x24] sm:$0xf]  ;;  %v851_v36 = vld [vmem:[%s1248_s0 + $0x14] sm:$0xf0] }
   0xa   :  { %158 = vmatpush.bf16.msra.mxu0 %v844_v5  ;;  %281 = vmatpush.bf16.msra.mxu2 %v844_v5  ;;  %v655_v35 = vld [vmem:[%s1248_s0 + $0x28] sm:$0xf0]  ;;  %v725_v37 = vld [vmem:[%s1248_s0 + $0x50] sm:$0xf]  ;;  %v859_v38 = vld [vmem:[%s1248_s0 + $0x54] sm:$0xf0]  ;;  %v738_v39 = vor.u32 %v860_v32, %v735_v33  ;;  %v646_v41 = vor.u32 %v851_v36, %v645_v31 }
   0xb   :  { %315 = vmatpush.bf16.msra.mxu3 %v847_v7  ;;  %192 = vmatpush.bf16.msra.mxu1 %v847_v7  ;;  %v658_v40 = vor.u32 %v852_v34, %v655_v35  ;;  %v726_v42 = vor.u32 %v859_v38, %v725_v37  ;;  %v653_v43 = vld [vmem:[%s1248_s0 + $0x20] sm:$0xf]  ;;  %v862_v44 = vld [vmem:[%s1248_s0 + $0x74] sm:$0xf]  ;;  %v743_v45 = vld [vmem:[%s1248_s0 + $0x78] sm:$0xf0] }
   0xc   :  { %v854_v46 = vld [vmem:[%s1248_s0 + $0x34] sm:$0xf]  ;;  %v663_v47 = vld [vmem:[%s1248_s0 + $0x38] sm:$0xf0]  ;;  %v853_v48 = vld [vmem:[%s1248_s0 + $0x24] sm:$0xf0]  ;;  %v746_v51 = vor.u32 %v862_v44, %v743_v45 }
   0xd   :  { %v733_v49 = vld [vmem:[%s1248_s0 + $0x60] sm:$0xf]  ;;  %v861_v50 = vld [vmem:[%s1248_s0 + $0x64] sm:$0xf0]  ;;  %v666_v52 = vor.u32 %v854_v46, %v663_v47  ;;  %v654_v53 = vor.u32 %v853_v48, %v653_v43  ;;  %v661_v55 = vld [vmem:[%s1248_s0 + $0x30] sm:$0xf] }
   0xe   :  { %159 = vmatpush.bf16.msra.mxu0 %v843_v12  ;;  %282 = vmatpush.bf16.msra.mxu2 %v843_v12  ;;  %v734_v54 = vor.u32 %v861_v50, %v733_v49  ;;  %v864_v56 = vld [vmem:[%s1248_s0 + $0x84] sm:$0xf]  ;;  %v763_v57 = vld [vmem:[%s1248_s0 + $0x88] sm:$0xf0]  ;;  %v761_v58 = vld [vmem:[%s1248_s0 + $0x80] sm:$0xf] }
   0xf   :  { %445 = vmatpush.bf16.msrb.mxu3 %v154_v6  ;;  %410 = vmatpush.bf16.msrb.mxu1 %v927_v0  ;;  %v865_v59 = vld [vmem:[%s1248_s0 + $0x84] sm:$0xf0]  ;;  %v855_v60 = vld [vmem:[%s1248_s0 + $0x34] sm:$0xf0]  ;;  %v741_v61 = vld [vmem:[%s1248_s0 + $0x70] sm:$0xf]  ;;  %v766_v63 = vor.u32 %v864_v56, %v763_v57 }
  0x10   :  { %747 = vmatmul.msk.bf16.vlgmr.msra.gmra.mxu3 %vm139_vm1, %v722_v13  ;;  %703 = vmatmul.msk.bf16.vlgmr.msra.gmra.mxu1 %vm139_vm1, %v642_v14  ;;  %v863_v62 = vld [vmem:[%s1248_s0 + $0x74] sm:$0xf0]  ;;  %v662_v1 = vor.u32 %v855_v60, %v661_v55  ;;  %v805_v3 = vld [vmem:[%s1248_s0 + $0xc0] sm:$0xf]  ;;  %v866_v4 = vld [vmem:[%s1248_s0 + $0x94] sm:$0xf] }
  0x11   :  { %v873_v8 = vld [vmem:[%s1248_s0 + $0xc4] sm:$0xf0]  ;;  %v872_v9 = vld [vmem:[%s1248_s0 + $0xc4] sm:$0xf]  ;;  %v807_v10 = vld [vmem:[%s1248_s0 + $0xc8] sm:$0xf0] }
  0x12   :  { %160 = vmatpush.bf16.msra.mxu0 %v842_v15  ;;  %283 = vmatpush.bf16.msra.mxu2 %v842_v15  ;;  %v806_v13 = vor.u32 %v873_v8, %v805_v3  ;;  %v810_v14 = vor.u32 %v872_v9, %v807_v10  ;;  %v869_v19 = vld [vmem:[%s1248_s0 + $0xa4] sm:$0xf0]  ;;  %v875_v20 = vld [vmem:[%s1248_s0 + $0xd4] sm:$0xf0]  ;;  %v874_v21 = vld [vmem:[%s1248_s0 + $0xd4] sm:$0xf] }
  0x13   :  { %411 = vmatpush.bf16.msrb.mxu1 %v937_v2  ;;  %446 = vmatpush.bf16.msrb.mxu3 %v847_v7  ;;  %v815_v22 = vld [vmem:[%s1248_s0 + $0xd8] sm:$0xf0]  ;;  %v871_v31 = vld [vmem:[%s1248_s0 + $0xb4] sm:$0xf0]  ;;  %v877_v32 = vld [vmem:[%s1248_s0 + $0xe4] sm:$0xf0] }
  0x14   :  { %v818_v26 = vor.u32 %v874_v21, %v815_v22  ;;  %v876_v33 = vld [vmem:[%s1248_s0 + $0xe4] sm:$0xf]  ;;  %v823_v34 = vld [vmem:[%s1248_s0 + $0xe8] sm:$0xf0]  ;;  %v1177_v49 = vld [vmem:[%s1249_s2] ss:$0 sm:$0xff] }
  0x15   :  { %v826_v38 = vor.u32 %v876_v33, %v823_v34 }
  0x16   :  { %161 = vmatpush.bf16.msra.mxu0 %v841_v16  ;;  %284 = vmatpush.bf16.msra.mxu2 %v841_v16 }
  0x17   :  { %412 = vmatpush.bf16.msrb.mxu1 %v844_v5 }
  0x1a   :  { %162 = vmatpush.bf16.msra.mxu0 %v840_v17  ;;  %285 = vmatpush.bf16.msra.mxu2 %v840_v17 }
  0x1b   :  { %413 = vmatpush.bf16.msrb.mxu1 %v843_v12 }
  0x1e   :  { %163 = vmatpush.bf16.msra.mxu0 %v839_v18  ;;  %286 = vmatpush.bf16.msra.mxu2 %v839_v18 }
  0x1f   :  { %414 = vmatpush.bf16.msrb.mxu1 %v842_v15 }
  0x20   :  { %748 = vmatmul.msk.bf16.gmra.mxu3 %vm139_vm1, %v730_v27  ;;  %704 = vmatmul.msk.bf16.gmra.mxu1 %vm139_vm1, %v650_v28  ;;  %v821_v27 = vld [vmem:[%s1248_s0 + $0xe0] sm:$0xf]  ;;  %v870_v28 = vld [vmem:[%s1248_s0 + $0xb4] sm:$0xf] }
  0x21   :  { %164 = vmatmul.bf16.vlgmr.msra.gmra.mxu0 %v638_v29  ;;  %287 = vmatmul.bf16.vlgmr.msra.gmra.mxu2 %v718_v30  ;;  %v787_v29 = vld [vmem:[%s1248_s0 + $0xb8] sm:$0xf0]  ;;  %v785_v30 = vld [vmem:[%s1248_s0 + $0xb0] sm:$0xf]  ;;  %v822_v37 = vor.u32 %v877_v32, %v821_v27 }
  0x22   :  { %568 = vmatpush.bf16.msrb.mxu2 %v154_v6  ;;  %533 = vmatpush.bf16.msrb.mxu0 %v927_v0  ;;  %v762_v0 = vor.u32 %v865_v59, %v761_v58  ;;  %v769_v6 = vld [vmem:[%s1248_s0 + $0x90] sm:$0xf]  ;;  %v790_v35 = vor.u32 %v870_v28, %v787_v29  ;;  %v786_v36 = vor.u32 %v871_v31, %v785_v30 }
  0x23   :  { %415 = vmatpush.bf16.msrb.mxu1 %v841_v16 }
  0x26   :  { %534 = vmatpush.bf16.msrb.mxu0 %v937_v2  ;;  %569 = vmatpush.bf16.msrb.mxu2 %v847_v7  ;;  %v742_v2 = vor.u32 %v863_v62, %v741_v61  ;;  %v867_v7 = vld [vmem:[%s1248_s0 + $0x94] sm:$0xf0] }
  0x27   :  { %416 = vmatpush.bf16.msrb.mxu1 %v840_v17 }
  0x2a   :  { %535 = vmatpush.bf16.msrb.mxu0 %v844_v5  ;;  %v771_v5 = vld [vmem:[%s1248_s0 + $0x98] sm:$0xf0] }
  0x2b   :  { %417 = vmatpush.bf16.msrb.mxu1 %v839_v18  ;;  %v774_v11 = vor.u32 %v866_v4, %v771_v5 }
  0x2e   :  { %536 = vmatpush.bf16.msrb.mxu0 %v843_v12  ;;  %v770_v12 = vor.u32 %v867_v7, %v769_v6 }
  0x30   :  { %749 = vmatmul.msk.bf16.gmra.mxu3 %vm139_vm1, %v738_v39  ;;  %705 = vmatmul.msk.bf16.gmra.mxu1 %vm139_vm1, %v658_v40  ;;  %v829_v39 = vld [vmem:[%s1248_s0 + $0xf0] sm:$0xf]  ;;  %v879_v40 = vld [vmem:[%s1248_s0 + $0xf4] sm:$0xf0] }
  0x31   :  { %169 = vmatmul.bf16.gmra.mxu0 %v646_v41  ;;  %292 = vmatmul.bf16.gmra.mxu2 %v726_v42  ;;  %v878_v41 = vld [vmem:[%s1248_s0 + $0xf4] sm:$0xf]  ;;  %v831_v42 = vld [vmem:[%s1248_s0 + $0xf8] sm:$0xf0]  ;;  %v830_v44 = vor.u32 %v879_v40, %v829_v39 }
  0x32   :  { %537 = vmatpush.bf16.msrb.mxu0 %v842_v15  ;;  %v813_v15 = vld [vmem:[%s1248_s0 + $0xd0] sm:$0xf]  ;;  %v834_v45 = vor.u32 %v878_v41, %v831_v42 }
  0x33   :  { %v814_v25 = vor.u32 %v875_v20, %v813_v15 }
  0x36   :  { %538 = vmatpush.bf16.msrb.mxu0 %v841_v16  ;;  %v868_v16 = vld [vmem:[%s1248_s0 + $0xa4] sm:$0xf] }
  0x3a   :  { %539 = vmatpush.bf16.msrb.mxu0 %v840_v17  ;;  %v779_v17 = vld [vmem:[%s1248_s0 + $0xa8] sm:$0xf0] }
  0x3b   :  { %v782_v23 = vor.u32 %v868_v16, %v779_v17 }
  0x3e   :  { %540 = vmatpush.bf16.msrb.mxu0 %v839_v18  ;;  %v777_v18 = vld [vmem:[%s1248_s0 + $0xa0] sm:$0xf] }
  0x3f   :  { %v778_v24 = vor.u32 %v869_v19, %v777_v18 }
  0x40   :  { %750 = vmatmul.msk.bf16.gmra.mxu3 %vm139_vm1, %v746_v51  ;;  %706 = vmatmul.msk.bf16.gmra.mxu1 %vm139_vm1, %v666_v52 }
  0x41   :  { %174 = vmatmul.bf16.gmra.mxu0 %v654_v53  ;;  %297 = vmatmul.bf16.gmra.mxu2 %v734_v54 }
  0x50   :  { %791 = vmatmul.msk.bf16.vlgmr.msrb.gmra.mxu3 %vm139_vm1, %v766_v63  ;;  %418 = vmatmul.bf16.vlgmr.msrb.gmra.mxu1 %v762_v0 }
  0x51   :  { %179 = vmatmul.bf16.gmra.mxu0 %v662_v1  ;;  %302 = vmatmul.bf16.gmra.mxu2 %v742_v2 }
  0x60   :  { %792 = vmatmul.msk.bf16.gmra.mxu3 %vm139_vm1, %v774_v11  ;;  %423 = vmatmul.bf16.gmra.mxu1 %v770_v12 }
  0x61   :  { %541 = vmatmul.bf16.vlgmr.msrb.gmra.mxu0 %v806_v13  ;;  %835 = vmatmul.msk.bf16.vlgmr.msrb.gmra.mxu2 %vm139_vm1, %v810_v14 }
  0x70   :  { %793 = vmatmul.msk.bf16.gmra.mxu3 %vm139_vm1, %v782_v23  ;;  %428 = vmatmul.bf16.gmra.mxu1 %v778_v24 }
  0x71   :  { %546 = vmatmul.bf16.gmra.mxu0 %v814_v25  ;;  %836 = vmatmul.msk.bf16.gmra.mxu2 %vm139_vm1, %v818_v26 }
  0x80   :  { %794 = vmatmul.msk.bf16.gmra.mxu3 %vm139_vm1, %v790_v35  ;;  %433 = vmatmul.bf16.gmra.mxu1 %v786_v36 }
  0x81   :  { %551 = vmatmul.bf16.gmra.mxu0 %v822_v37  ;;  %837 = vmatmul.msk.bf16.gmra.mxu2 %vm139_vm1, %v826_v38 }
  0x8d   :  { %v194_v43 = vpop.f32.mrf.mxu1 }
  0x91   :  { %556 = vmatmul.bf16.gmra.mxu0 %v830_v44  ;;  %838 = vmatmul.msk.bf16.gmra.mxu2 %vm139_vm1, %v834_v45 }
  0x93   :  { %v317_v46 = vpop.f32.mrf.mxu3 }
  0x95   :  { %v196_v47 = vpop.f32.mrf.mxu1 }
  0x9b   :  { %v319_v48 = vpop.f32.mrf.mxu3 }
  0x9d   :  { %v199_v50 = vpop.f32.mrf.mxu1 }
  0x9e   :  { %v165_v51 = vpop.f32.mrf.mxu0 }
  0x9f   :  { %v166_v52 = vadd.f32 %v1177_v49, %v165_v51 }
  0xa1   :  { %v195_v53 = vadd.f32 %v194_v43, %v166_v52 }
  0xa3   :  { %v322_v54 = vpop.f32.mrf.mxu3  ;;  %v214_v61 = vmax.f32 %v195_v53, 0.0 }
  0xa4   :  { %v288_v55 = vpop.f32.mrf.mxu2 }
  0xa5   :  { %v289_v56 = vadd.f32 %v1177_v49, %v288_v55  ;;  %v201_v57 = vpop.f32.mrf.mxu1 }
  0xa6   :  { %v167_v58 = vpop.f32.mrf.mxu0 }
  0xa7   :  { %v318_v59 = vadd.f32 %v317_v46, %v289_v56  ;;  %v168_v60 = vadd.f32 %v1177_v49, %v167_v58 }
  0xa9   :  { %v337_v62 = vmax.f32 %v318_v59, 0.0  ;;  %v197_v63 = vadd.f32 %v196_v47, %v168_v60 }
  0xab   :  { %v1182_v0 = vmax.f32 %v214_v61, %v337_v62  ;;  %v324_v1 = vpop.f32.mrf.mxu3  ;;  %v215_v8 = vmax.f32 %v197_v63, 0.0 }
  0xac   :  { %v290_v2 = vpop.f32.mrf.mxu2 }
  0xad   :  { %v291_v3 = vadd.f32 %v1177_v49, %v290_v2  ;;  %v204_v4 = vpop.f32.mrf.mxu1 }
  0xae   :  { %v170_v5 = vpop.f32.mrf.mxu0 }
  0xaf   :  { %v320_v6 = vadd.f32 %v319_v48, %v291_v3  ;;  %v171_v7 = vadd.f32 %v1177_v49, %v170_v5 }
  0xb1   :  { %v338_v9 = vmax.f32 %v320_v6, 0.0  ;;  %v200_v10 = vadd.f32 %v199_v50, %v171_v7 }
  0xb3   :  { %v1186_v11 = vmax.f32 %v215_v8, %v338_v9  ;;  %v327_v12 = vpop.f32.mrf.mxu3  ;;  %v216_v19 = vmax.f32 %v200_v10, 0.0 }
  0xb4   :  { %v293_v13 = vpop.f32.mrf.mxu2 }
  0xb5   :  { %v294_v14 = vadd.f32 %v1177_v49, %v293_v13  ;;  %v206_v15 = vpop.f32.mrf.mxu1 }
  0xb6   :  { %v172_v16 = vpop.f32.mrf.mxu0 }
  0xb7   :  { %v323_v17 = vadd.f32 %v322_v54, %v294_v14  ;;  %v173_v18 = vadd.f32 %v1177_v49, %v172_v16 }
  0xb9   :  { %v339_v20 = vmax.f32 %v323_v17, 0.0  ;;  %v202_v21 = vadd.f32 %v201_v57, %v173_v18 }
  0xbb   :  { %v1190_v22 = vmax.f32 %v216_v19, %v339_v20  ;;  %v329_v23 = vpop.f32.mrf.mxu3  ;;  %v217_v30 = vmax.f32 %v202_v21, 0.0 }
  0xbc   :  { %v295_v24 = vpop.f32.mrf.mxu2 }
  0xbd   :  { %v296_v25 = vadd.f32 %v1177_v49, %v295_v24  ;;  %v209_v26 = vpop.f32.mrf.mxu1 }
  0xbe   :  { %v175_v27 = vpop.f32.mrf.mxu0 }
  0xbf   :  { %v325_v28 = vadd.f32 %v324_v1, %v296_v25  ;;  %v176_v29 = vadd.f32 %v1177_v49, %v175_v27 }
  0xc1   :  { %v340_v31 = vmax.f32 %v325_v28, 0.0  ;;  %v205_v32 = vadd.f32 %v204_v4, %v176_v29 }
  0xc3   :  { %v1194_v33 = vmax.f32 %v217_v30, %v340_v31  ;;  %v332_v34 = vpop.f32.mrf.mxu3  ;;  %v218_v41 = vmax.f32 %v205_v32, 0.0 }
  0xc4   :  { %v298_v35 = vpop.f32.mrf.mxu2 }
  0xc5   :  { %v299_v36 = vadd.f32 %v1177_v49, %v298_v35  ;;  %v211_v37 = vpop.f32.mrf.mxu1 }
  0xc6   :  { %v177_v38 = vpop.f32.mrf.mxu0 }
  0xc7   :  { %v328_v39 = vadd.f32 %v327_v12, %v299_v36  ;;  %v178_v40 = vadd.f32 %v1177_v49, %v177_v38 }
  0xc9   :  { %v341_v42 = vmax.f32 %v328_v39, 0.0  ;;  %v207_v43 = vadd.f32 %v206_v15, %v178_v40 }
  0xcb   :  { %v1198_v44 = vmax.f32 %v218_v41, %v341_v42  ;;  %v334_v45 = vpop.f32.mrf.mxu3  ;;  %v219_v53 = vmax.f32 %v207_v43, 0.0 }
  0xcc   :  { %v300_v46 = vpop.f32.mrf.mxu2 }
  0xcd   :  { %v301_v47 = vadd.f32 %v1177_v49, %v300_v46  ;;  %v419_v50 = vpop.f32.mrf.mxu1 }
  0xce   :  { %v180_v48 = vpop.f32.mrf.mxu0  ;;  %v420_v14 = vadd.f32 %v1177_v49, %v419_v50 }
  0xcf   :  { %v330_v51 = vadd.f32 %v329_v23, %v301_v47  ;;  %v181_v52 = vadd.f32 %v1177_v49, %v180_v48 }
  0xd1   :  { %v342_v54 = vmax.f32 %v330_v51, 0.0  ;;  %v210_v55 = vadd.f32 %v209_v26, %v181_v52 }
  0xd3   :  { %v1202_v56 = vmax.f32 %v219_v53, %v342_v54  ;;  %v448_v57 = vpop.f32.mrf.mxu3  ;;  %v220_v1 = vmax.f32 %v210_v55, 0.0 }
  0xd4   :  { %v303_v58 = vpop.f32.mrf.mxu2  ;;  %v449_v20 = vadd.f32 %v448_v57, %v420_v14 }
  0xd5   :  { %v304_v59 = vadd.f32 %v1177_v49, %v303_v58  ;;  %v421_v63 = vpop.f32.mrf.mxu1 }
  0xd6   :  { %v182_v60 = vpop.f32.mrf.mxu0  ;;  %v422_v21 = vadd.f32 %v1177_v49, %v421_v63  ;;  %v468_v24 = vmax.f32 %v449_v20, 0.0 }
  0xd7   :  { %v333_v61 = vadd.f32 %v332_v34, %v304_v59  ;;  %v183_v62 = vadd.f32 %v1177_v49, %v182_v60 }
  0xd9   :  { %v343_v2 = vmax.f32 %v333_v61, 0.0  ;;  %v212_v3 = vadd.f32 %v211_v37, %v183_v62 }
  0xdb   :  { %v1206_v4 = vmax.f32 %v220_v1, %v343_v2  ;;  %v450_v6 = vpop.f32.mrf.mxu3  ;;  %v221_v10 = vmax.f32 %v212_v3, 0.0 }
  0xdc   :  { %v305_v5 = vpop.f32.mrf.mxu2  ;;  %v451_v25 = vadd.f32 %v450_v6, %v422_v21 }
  0xdd   :  { %v306_v7 = vadd.f32 %v1177_v49, %v305_v5  ;;  %v424_v13 = vpop.f32.mrf.mxu1 }
  0xde   :  { %v542_v8 = vpop.f32.mrf.mxu0  ;;  %v469_v32 = vmax.f32 %v451_v25, 0.0  ;;  %v425_v39 = vadd.f32 %v1177_v49, %v424_v13 }
  0xdf   :  { %v335_v9 = vadd.f32 %v334_v45, %v306_v7  ;;  %v543_v16 = vadd.f32 %v1177_v49, %v542_v8 }
  0xe1   :  { %v344_v12 = vmax.f32 %v335_v9, 0.0 }
  0xe3   :  { %v1210_v15 = vmax.f32 %v221_v10, %v344_v12  ;;  %v453_v19 = vpop.f32.mrf.mxu3 }
  0xe4   :  { %v571_v17 = vpop.f32.mrf.mxu2  ;;  %v454_v47 = vadd.f32 %v453_v19, %v425_v39 }
  0xe5   :  { %v572_v23 = vadd.f32 %v571_v17, %v543_v16  ;;  %v426_v29 = vpop.f32.mrf.mxu1 }
  0xe6   :  { %v544_v18 = vpop.f32.mrf.mxu0  ;;  %v427_v48 = vadd.f32 %v1177_v49, %v426_v29 }
  0xe7   :  { %v591_v26 = vmax.f32 %v572_v23, 0.0  ;;  %v545_v27 = vadd.f32 %v1177_v49, %v544_v18 }
  0xe9   :  { %v599_v34 = vmax.f32 %v468_v24, %v591_v26 }
  0xeb   :  { %v455_v36 = vpop.f32.mrf.mxu3  ;;  %v607_v38 = vmax.f32 %v1182_v0, %v599_v34  ;;  %v470_v0 = vmax.f32 %v454_v47, 0.0 }
  0xec   :  { %v573_v28 = vpop.f32.mrf.mxu2  ;;  %v456_v52 = vadd.f32 %v455_v36, %v427_v48 }
  0xed   :  { %v574_v30 = vadd.f32 %v573_v28, %v545_v27  ;;  %v429_v46 = vpop.f32.mrf.mxu1 }
  0xee   :  { %v547_v31 = vpop.f32.mrf.mxu0  ;;  %v471_v58 = vmax.f32 %v456_v52, 0.0  ;;  %v430_v1 = vadd.f32 %v1177_v49, %v429_v46 }
  0xef   :  { %v592_v35 = vmax.f32 %v574_v30, 0.0  ;;  %v548_v41 = vadd.f32 %v1177_v49, %v547_v31 }
  0xf1   :  { %v600_v37 = vmax.f32 %v469_v32, %v592_v35 }
  0xf3   :  { %v608_v40 = vmax.f32 %v1186_v11, %v600_v37  ;;  %v458_v51 = vpop.f32.mrf.mxu3 }
  0xf4   :  { %v576_v42 = vpop.f32.mrf.mxu2  ;;  %v459_v9 = vadd.f32 %v458_v51, %v430_v1 }
  0xf5   :  { %v883_v43 = vpack.c.bf16 %v608_v40, %v607_v38  ;;  %v577_v50 = vadd.f32 %v576_v42, %v548_v41  ;;  %v431_v61 = vpop.f32.mrf.mxu1 }
  0xf6   :  { %v549_v45 = vpop.f32.mrf.mxu0  ;;  %v432_v10 = vadd.f32 %v1177_v49, %v431_v61 }
  0xf7   :  { %884 = vst [vmem:[%s1250_s3] sm:$0xff] %v883_v43   ;;  %v593_v53 = vmax.f32 %v577_v50, 0.0  ;;  %v550_v11 = vadd.f32 %v1177_v49, %v549_v45 }
  0xf9   :  { %v601_v59 = vmax.f32 %v470_v0, %v593_v53 }
  0xfb   :  { %v609_v63 = vmax.f32 %v1190_v22, %v601_v59  ;;  %v460_v5 = vpop.f32.mrf.mxu3  ;;  %v472_v22 = vmax.f32 %v459_v9, 0.0 }
  0xfc   :  { %v578_v54 = vpop.f32.mrf.mxu2  ;;  %v461_v14 = vadd.f32 %v460_v5, %v432_v10 }
  0xfd   :  { %v579_v55 = vadd.f32 %v578_v54, %v550_v11  ;;  %v434_v13 = vpop.f32.mrf.mxu1 }
  0xfe   :  { %v552_v57 = vpop.f32.mrf.mxu0  ;;  %v473_v21 = vmax.f32 %v461_v14, 0.0  ;;  %v435_v27 = vadd.f32 %v1177_v49, %v434_v13 }
  0xff   :  { %v594_v60 = vmax.f32 %v579_v55, 0.0  ;;  %v553_v3 = vadd.f32 %v1177_v49, %v552_v57 }
 0x101   :  { %v602_v62 = vmax.f32 %v471_v58, %v594_v60 }
 0x103   :  { %v610_v2 = vmax.f32 %v1194_v33, %v602_v62  ;;  %v463_v19 = vpop.f32.mrf.mxu3 }
 0x104   :  { %v581_v6 = vpop.f32.mrf.mxu2  ;;  %v464_v34 = vadd.f32 %v463_v19, %v435_v27 }
 0x105   :  { %v888_v7 = vpack.c.bf16 %v610_v2, %v609_v63  ;;  %v582_v12 = vadd.f32 %v581_v6, %v553_v3  ;;  %v436_v30 = vpop.f32.mrf.mxu1 }
 0x106   :  { %v554_v8 = vpop.f32.mrf.mxu0  ;;  %v437_v35 = vadd.f32 %v1177_v49, %v436_v30 }
 0x107   :  { %900 = vst [vmem:[%s1250_s3 + $0x8] sm:$0xff] %v888_v7   ;;  %v595_v16 = vmax.f32 %v582_v12, 0.0  ;;  %v555_v33 = vadd.f32 %v1177_v49, %v554_v8 }
 0x109   :  { %v603_v23 = vmax.f32 %v472_v22, %v595_v16 }
 0x10b   :  { %v611_v26 = vmax.f32 %v1198_v44, %v603_v23  ;;  %v465_v37 = vpop.f32.mrf.mxu3  ;;  %v474_v44 = vmax.f32 %v464_v34, 0.0 }
 0x10c   :  { %v583_v17 = vpop.f32.mrf.mxu2  ;;  %v466_v39 = vadd.f32 %v465_v37, %v437_v35 }
 0x10d   :  { %v584_v18 = vadd.f32 %v583_v17, %v555_v33 }
 0x10e   :  { %v557_v20 = vpop.f32.mrf.mxu0  ;;  %v475_v43 = vmax.f32 %v466_v39, 0.0 }
 0x10f   :  { %v596_v24 = vmax.f32 %v584_v18, 0.0  ;;  %v558_v29 = vadd.f32 %v1177_v49, %v557_v20 }
 0x111   :  { %v604_v25 = vmax.f32 %v473_v21, %v596_v24 }
 0x113   :  { %v612_v28 = vmax.f32 %v1202_v56, %v604_v25 }
 0x114   :  { %v586_v31 = vpop.f32.mrf.mxu2 }
 0x115   :  { %v893_v32 = vpack.c.bf16 %v612_v28, %v611_v26  ;;  %v587_v36 = vadd.f32 %v586_v31, %v558_v29 }
 0x116   :  { %v559_v38 = vpop.f32.mrf.mxu0 }
 0x117   :  { %901 = vst [vmem:[%s1250_s3 + $0x10] sm:$0xff] %v893_v32   ;;  %v597_v40 = vmax.f32 %v587_v36, 0.0  ;;  %v560_v56 = vadd.f32 %v1177_v49, %v559_v38 }
 0x119   :  { %v605_v45 = vmax.f32 %v474_v44, %v597_v40 }
 0x11b   :  { %v613_v48 = vmax.f32 %v1206_v4, %v605_v45 }
 0x11c   :  { %v588_v41 = vpop.f32.mrf.mxu2 }
 0x11d   :  { %v589_v42 = vadd.f32 %v588_v41, %v560_v56 }
 0x11f   :  { %v598_v46 = vmax.f32 %v589_v42, 0.0 }
 0x121   :  { %v606_v47 = vmax.f32 %v475_v43, %v598_v46 }
 0x123   :  { %v614_v50 = vmax.f32 %v1210_v15, %v606_v47 }
 0x125   :  { %v898_v51 = vpack.c.bf16 %v614_v50, %v613_v48 }
 0x127   :  { %902 = vst [vmem:[%s1250_s3 + $0x18] sm:$0xff] %v898_v51  }

// kernel: lenet5_forward.5
= control target key start
LH: loop header
LB: loop body
LE: loop exit
PB: predicated region body
PF: predicated region fallthrough
CT: control target
= control target key end

     0   :  { %s895_s0 = inlined_call_operand.vmem [shape: bf16[2,400], index: 0, kind: input, shape index: {}]   ;;  %s896_s1 = inlined_call_operand.vmem [shape: bf16[400,128], index: 1, kind: input, shape index: {}]   ;;  %s897_s2 = inlined_call_operand.vmem [shape: f32[1,128], index: 2, kind: input, shape index: {}]   ;;  %s898_s3 = inlined_call_operand.vmem [shape: bf16[128,128], index: 3, kind: input, shape index: {}]   ;;  %s899_s4 = inlined_call_operand.vmem [shape: f32[1,128], index: 4, kind: input, shape index: {}]   ;;  %s900_s5 = inlined_call_operand.vmem [shape: bf16[128,128], index: 5, kind: input, shape index: {}]   ;;  %s901_s6 = inlined_call_operand.vmem [shape: f32[1,128], index: 6, kind: input, shape index: {}]   ;;  %s902_s7 = inlined_call_operand.hbm [shape: f32[2,128], index: 7, kind: output, shape index: {}]  }
   0x1   :  { %v652_v0 = vld [vmem:[%s896_s1 + $0x38] sm:$0xff]  ;;  %v651_v3 = vld [vmem:[%s896_s1 + $0x30] sm:$0xff]  ;;  %v650_v6 = vld [vmem:[%s896_s1 + $0x28] sm:$0xff] }
   0x2   :  { %v660_v1 = vld [vmem:[%s896_s1 + $0x78] sm:$0xff]  ;;  %245 = vmatpush.bf16.msra.mxu0 %v652_v0  ;;  %v659_v4 = vld [vmem:[%s896_s1 + $0x70] sm:$0xff]  ;;  %v658_v7 = vld [vmem:[%s896_s1 + $0x68] sm:$0xff] }
   0x3   :  { %v668_v2 = vld [vmem:[%s896_s1 + $0xb8] sm:$0xff]  ;;  %258 = vmatpush.bf16.msra.mxu1 %v660_v1  ;;  %v667_v5 = vld [vmem:[%s896_s1 + $0xb0] sm:$0xff]  ;;  %v669_v8 = vld [vmem:[%s896_s1 + $0xc0] sm:$0xff] }
   0x4   :  { %271 = vmatpush.bf16.msra.mxu2 %v668_v2  ;;  %v666_v9 = vld [vmem:[%s896_s1 + $0xa8] sm:$0xff]  ;;  %v28_v10 = vld [vmem:[%s895_s0] sm:$0xf]  ;;  %291 = vmatpush.bf16.msra.mxu3 %v669_v8  ;;  %v677_v11 = vld [vmem:[%s898_s3 + $0x38] sm:$0xff] }
   0x5   :  { %84 = vst [vmem:[#allocation1] ss:$9 sm:$0xff] %v28_v10  ;;  %v649_v12 = vld [vmem:[%s896_s1 + $0x20] sm:$0xff]  ;;  %v676_v15 = vld [vmem:[%s898_s3 + $0x30] sm:$0xff] }
   0x6   :  { %246 = vmatpush.bf16.msra.mxu0 %v651_v3  ;;  %v657_v13 = vld [vmem:[%s896_s1 + $0x60] sm:$0xff] }
   0x7   :  { %259 = vmatpush.bf16.msra.mxu1 %v659_v4  ;;  %v665_v14 = vld [vmem:[%s896_s1 + $0xa0] sm:$0xff] }
   0x8   :  { %272 = vmatpush.bf16.msra.mxu2 %v667_v5  ;;  %367 = vmatpush.bf16.msrb.mxu3 %v677_v11 }
   0xa   :  { %247 = vmatpush.bf16.msra.mxu0 %v650_v6 }
   0xb   :  { %260 = vmatpush.bf16.msra.mxu1 %v658_v7 }
   0xc   :  { %273 = vmatpush.bf16.msra.mxu2 %v666_v9 }
   0xd   :  { %12 = vsyncpa [#allocation3], 0  ;;  %vm242_vm0 = vcmask 130048   ;;  %v648_v16 = vld [vmem:[%s896_s1 + $0x18] sm:$0xff]  ;;  %368 = vmatpush.bf16.msrb.mxu3 %v676_v15  ;;  %v675_v20 = vld [vmem:[%s898_s3 + $0x28] sm:$0xff]  ;;  %s716_s16 = smov [#allocation2]  }
   0xe   :  { %248 = vmatpush.bf16.msra.mxu0 %v649_v12  ;;  %v656_v17 = vld [vmem:[%s896_s1 + $0x58] sm:$0xff]  ;;  %v647_v21 = vld [vmem:[%s896_s1 + $0x10] sm:$0xff]  ;;  %v674_v24 = vld [vmem:[%s898_s3 + $0x20] sm:$0xff] }
   0xf   :  { %261 = vmatpush.bf16.msra.mxu1 %v657_v13  ;;  %v664_v18 = vld [vmem:[%s896_s1 + $0x98] sm:$0xff]  ;;  %v655_v22 = vld [vmem:[%s896_s1 + $0x50] sm:$0xff]  ;;  %v646_v25 = vld [vmem:[%s896_s1 + $0x8] sm:$0xff] }
  0x10   :  { %274 = vmatpush.bf16.msra.mxu2 %v665_v14  ;;  %v88_v19 = vld [vmem:[#allocation1 + $0x1b] sm:$0xff]  ;;  %v663_v23 = vld [vmem:[%s896_s1 + $0x90] sm:$0xff]  ;;  %v654_v26 = vld [vmem:[%s896_s1 + $0x48] sm:$0xff] }
  0x11   :  { %580 = vmatmul.msk.bf16.vlgmr.msra.gmra.mxu3 %vm242_vm0, %v88_v19  ;;  %v662_v27 = vld [vmem:[%s896_s1 + $0x88] sm:$0xff]  ;;  %v645_v28 = vld [vmem:[%s896_s1] sm:$0xff]  ;;  %v87_v33 = vld [vmem:[#allocation1 + $0x12] sm:$0xff] }
  0x12   :  { %249 = vmatpush.bf16.msra.mxu0 %v648_v16  ;;  %369 = vmatpush.bf16.msrb.mxu3 %v675_v20  ;;  %v653_v29 = vld [vmem:[%s896_s1 + $0x40] sm:$0xff]  ;;  %v86_v32 = vld [vmem:[#allocation1 + $0x9] sm:$0xff]  ;;  %v673_v34 = vld [vmem:[%s898_s3 + $0x18] sm:$0xff] }
  0x13   :  { %262 = vmatpush.bf16.msra.mxu1 %v656_v17  ;;  %v661_v30 = vld [vmem:[%s896_s1 + $0x80] sm:$0xff]  ;;  %v672_v35 = vld [vmem:[%s898_s3 + $0x10] sm:$0xff]  ;;  %v671_v36 = vld [vmem:[%s898_s3 + $0x8] sm:$0xff]  ;;  %s469_s1 = sshll.u32 %s716_s16, 4  ;;  %s470_s1 = int_to_ptr.vmem [resolvable:$true] %s469_s1 }
  0x14   :  { %275 = vmatpush.bf16.msra.mxu2 %v664_v18  ;;  %v85_v31 = vld [vmem:[#allocation1] sm:$0xff]  ;;  %v685_v38 = vld [vmem:[%s900_s5 + $0x38] sm:$0xff]  ;;  %v684_v39 = vld [vmem:[%s900_s5 + $0x30] sm:$0xff] }
  0x15   :  { %v670_v37 = vld [vmem:[%s898_s3] sm:$0xff]  ;;  %v683_v41 = vld [vmem:[%s900_s5 + $0x28] sm:$0xff]  ;;  %v681_v45 = vld [vmem:[%s900_s5 + $0x18] sm:$0xff] }
  0x16   :  { %250 = vmatpush.bf16.msra.mxu0 %v647_v21  ;;  %370 = vmatpush.bf16.msrb.mxu3 %v674_v24  ;;  %v682_v42 = vld [vmem:[%s900_s5 + $0x20] sm:$0xff]  ;;  %v680_v49 = vld [vmem:[%s900_s5 + $0x10] sm:$0xff]  ;;  %v679_v59 = vld [vmem:[%s900_s5 + $0x8] sm:$0xff] }
  0x17   :  { %263 = vmatpush.bf16.msra.mxu1 %v655_v22  ;;  %v687_v43 = vld [vmem:[%s897_s2] ss:$0 sm:$0xff] }
  0x18   :  { %276 = vmatpush.bf16.msra.mxu2 %v663_v23  ;;  %v678_v60 = vld [vmem:[%s900_s5] sm:$0xff]  ;;  %s471_s5 = sshll.u32 %s902_s7, 4  ;;  %s472_s5 = int_to_ptr.hbm [resolvable:$true] %s471_s5 }
  0x19   :  { %v688_v61 = vld [vmem:[%s899_s4] ss:$0 sm:$0xff] }
  0x1a   :  { %251 = vmatpush.bf16.msra.mxu0 %v646_v25  ;;  %371 = vmatpush.bf16.msrb.mxu3 %v673_v34  ;;  %v689_v3 = vld [vmem:[%s901_s6] ss:$0 sm:$0xff] }
  0x1b   :  { %264 = vmatpush.bf16.msra.mxu1 %v654_v26 }
  0x1c   :  { %277 = vmatpush.bf16.msra.mxu2 %v662_v27 }
  0x1e   :  { %252 = vmatpush.bf16.msra.mxu0 %v645_v28  ;;  %372 = vmatpush.bf16.msrb.mxu3 %v672_v35 }
  0x1f   :  { %265 = vmatpush.bf16.msra.mxu1 %v653_v29 }
  0x20   :  { %278 = vmatpush.bf16.msra.mxu2 %v661_v30 }
  0x21   :  { %253 = vmatmul.bf16.vlgmr.msra.gmra.mxu0 %v85_v31 }
  0x22   :  { %266 = vmatmul.bf16.vlgmr.msra.gmra.mxu1 %v86_v32  ;;  %373 = vmatpush.bf16.msrb.mxu3 %v671_v36 }
  0x23   :  { %279 = vmatmul.bf16.vlgmr.msra.gmra.mxu2 %v87_v33  ;;  %450 = vmatpush.bf16.msrb.mxu0 %v685_v38 }
  0x26   :  { %374 = vmatpush.bf16.msrb.mxu3 %v670_v37 }
  0x27   :  { %451 = vmatpush.bf16.msrb.mxu0 %v684_v39 }
  0x2b   :  { %452 = vmatpush.bf16.msrb.mxu0 %v683_v41 }
  0x2f   :  { %453 = vmatpush.bf16.msrb.mxu0 %v682_v42 }
  0x33   :  { %454 = vmatpush.bf16.msrb.mxu0 %v681_v45 }
  0x37   :  { %455 = vmatpush.bf16.msrb.mxu0 %v680_v49 }
  0x3b   :  { %456 = vmatpush.bf16.msrb.mxu0 %v679_v59 }
  0x3f   :  { %457 = vmatpush.bf16.msrb.mxu0 %v678_v60 }
  0x94   :  { %v293_v40 = vpop.f32.mrf.mxu3 }
  0x9c   :  { %v295_v44 = vpop.f32.mrf.mxu3 }
  0x9e   :  { %v254_v46 = vpop.f32.mrf.mxu0 }
  0x9f   :  { %v267_v47 = vpop.f32.mrf.mxu1  ;;  %v255_v48 = vadd.f32 %v687_v43, %v254_v46 }
  0xa1   :  { %v268_v50 = vadd.f32 %v267_v47, %v255_v48 }
  0xa6   :  { %v280_v51 = vpop.f32.mrf.mxu2  ;;  %v256_v53 = vpop.f32.mrf.mxu0 }
  0xa7   :  { %v281_v52 = vadd.f32 %v280_v51, %v268_v50  ;;  %v269_v54 = vpop.f32.mrf.mxu1 }
  0xa9   :  { %v294_v55 = vadd.f32 %v293_v40, %v281_v52 }
  0xab   :  { %v297_v56 = vmax.f32 %v294_v55, 0.0 }
  0xad   :  { %v298_v57 = vpack.c.bf16 %v297_v56, %v297_v56 }
  0xae   :  { %v282_v58 = vpop.f32.mrf.mxu2 }
  0xaf   :  { %375 = vmatmul.bf16.vlgmr.msrb.gmra.mxu3 %v298_v57 }
 0x132   :  { %v376_v62 = vpop.f32.mrf.mxu3 }
 0x133   :  { %v377_v63 = vadd.f32 %v688_v61, %v376_v62 }
 0x135   :  { %v380_v0 = vmax.f32 %v377_v63, 0.0 }
 0x137   :  { %v381_v1 = vpack.c.bf16 %v380_v0, %v380_v0 }
 0x139   :  { %458 = vmatmul.bf16.vlgmr.msrb.gmra.mxu0 %v381_v1 }
 0x13a   :  { %v378_v2 = vpop.f32.mrf.mxu3 }
 0x1b6   :  { %v459_v4 = vpop.f32.mrf.mxu0 }
 0x1b7   :  { %v460_v5 = vadd.f32 %v689_v3, %v459_v4 }
 0x1b9   :  { %463 = vst [vmem:[#allocation2] sm:$0x3] %v460_v5 }
 0x1ba   :  { %474 = dma.vmem_to_hbm [thread:$0]  %s470_s1, 32, %s472_s5, [#allocation3]  }
 0x1be   :  { %v461_v6 = vpop.f32.mrf.mxu0 }
 0x1bf   :  { %714 = dma.done.wait [#allocation3], 32  }
 0x1c0   :  { %715 = vsyncadd [#allocation3], 4294967264 }
 0x1c1   :  { %479 = vsyncpa [#allocation3], 1 }

</bundles_post_ra>
